<compile_context>
chip_gen: v7x
topology: tpu7x:2x2x1
jax: 0.10.0
libtpu: 0.0.40
codegen_flags: <defaults>
</compile_context>

<pallas_src>
import functools

import jax
import jax.numpy as jnp
import numpy as np
from jax import lax
from jax.experimental import pallas as pl
from jax.experimental.pallas import tpu as pltpu

BN_EPS = 1e-5


# ------------------------------ fused kernel ------------------------------- #

def _decoder_kernel(x_ref, w1t_ref, s1_ref, b1_ref, dmat_ref, wdm_ref, sd_ref,
                    bd_ref, w2t_ref, s2_ref, b2_ref, o_ref, xd_ref, cols_ref,
                    *, H, W, K, stride, lo, Ho):
    """One batch sample: conv1x1 -> (dilate+pad+conv3x3) -> conv1x1, all fused.

    x_ref:    (1, Cin, H*W)            NCHW sample, spatial flattened (lane-dense)
    w1t_ref:  (Cmid, Cin)              conv1 weight, transposed
    dmat_ref: (W, Wp)                  0/1 row dilation+padding placement matrix
    wdm_ref:  (Cmid, K*K*Cmid)         deconv-as-conv weight, im2col ordered
    w2t_ref:  (Cout, Cmid)             conv2 weight, transposed
    s*/b*:    (C, 1)                   folded BatchNorm scale / bias columns
    o_ref:    (1, Cout, Ho*Wp)         output with row stride Wp (K-1 junk cols/row)
    xd_ref:   (Cmid, Hp*Wp + K-1)      VMEM scratch: flattened dilated+padded image
    cols_ref: (K*K*Cmid, Ho*Wp)        VMEM scratch: im2col matrix
    """
    Wp = dmat_ref.shape[1]
    cmid = w1t_ref.shape[0]

    # ---- conv1: 1x1 conv + BN + ReLU, lane-dense (Cmid, H*W) ------------------
    x = x_ref[0]                                                   # (Cin, H*W)
    h1 = jnp.dot(w1t_ref[...], x, preferred_element_type=jnp.float32)
    h1 = jnp.maximum(h1 * s1_ref[...] + b1_ref[...], 0.0)          # (Cmid, H*W)

    # ---- zero-dilate + pad h1 into VMEM scratch (never touches HBM) ----------
    xd_ref[...] = jnp.zeros_like(xd_ref)
    dmat = dmat_ref[...]                                           # (W, Wp)
    for i in range(H):                       # static unroll; H is small here
        row = h1[:, i * W:(i + 1) * W]                             # (Cmid, W)
        drow = jnp.dot(row, dmat, preferred_element_type=jnp.float32)  # (Cmid, Wp)
        off = (lo + i * stride) * Wp
        xd_ref[:, off:off + Wp] = drow

    # ---- im2col: each tap is one contiguous lane-slice of the flat image -----
    for kh in range(K):
        for kw in range(K):
            t = kh * K + kw
            start = kh * Wp + kw
            cols_ref[t * cmid:(t + 1) * cmid, :] = xd_ref[:, start:start + Ho * Wp]

    # ---- deconv as ONE (Cmid, K*K*Cmid) @ (K*K*Cmid, Ho*Wp) matmul + BN + ReLU
    h2 = jnp.dot(wdm_ref[...], cols_ref[...], preferred_element_type=jnp.float32)
    h2 = jnp.maximum(h2 * sd_ref[...] + bd_ref[...], 0.0)          # (Cmid, Ho*Wp)

    # ---- conv2: 1x1 conv + BN + ReLU -----------------------------------------
    h3 = jnp.dot(w2t_ref[...], h2, preferred_element_type=jnp.float32)
    h3 = jnp.maximum(h3 * s2_ref[...] + b2_ref[...], 0.0)          # (Cout, Ho*Wp)
    o_ref[...] = h3[None].astype(o_ref.dtype)


# ------------------------------- glue / model ------------------------------ #

def fold_bn(gamma, beta, mean, var, eps=BN_EPS):
    scale = gamma / jnp.sqrt(var + eps)
    bias = beta - mean * scale
    return scale, bias


def decoder_forward(x_nchw, params, *, kernel_size, stride, padding, output_padding):
    n, cin, h, w = x_nchw.shape
    cmid = params['w1'].shape[1]
    cout = params['w2'].shape[1]
    k, st, p, op = kernel_size, stride, padding, output_padding

    lo = k - 1 - p
    hi = lo + op
    assert lo >= 0, "padding > kernel_size - 1 is not supported by this kernel"
    assert 0 <= op < st, "output_padding must satisfy 0 <= output_padding < stride"

    hp = (h - 1) * st + 1 + lo + hi          # dilated + padded height
    wp = (w - 1) * st + 1 + lo + hi          # dilated + padded width
    ho, wo = hp - k + 1, wp - k + 1          # PyTorch ConvTranspose2d output size

    s1, b1 = fold_bn(params['bn1_gamma'], params['bn1_beta'],
                     params['bn1_mean'], params['bn1_var'])
    sd, bd = fold_bn(params['bnd_gamma'], params['bnd_beta'],
                     params['bnd_mean'], params['bnd_var'])
    s2, b2 = fold_bn(params['bn2_gamma'], params['bn2_beta'],
                     params['bn2_mean'], params['bn2_var'])

    # Weights in channel-major (transposed) matmul layout.
    w1t = params['w1'].T                                             # (Cmid, Cin)
    # torch ConvTranspose2d weight (Cin, Cout, K, K) -> flipped conv weight,
    # flattened with im2col (kh, kw, ci) ordering.
    wflip = jnp.transpose(params['wd'][:, :, ::-1, ::-1], (2, 3, 0, 1))  # (K,K,Ci,Co)
    wdm = wflip.reshape(k * k * cmid, cmid).T                        # (Cmid, K*K*Cmid)
    w2t = params['w2'].T                                             # (Cout, Cmid)

    # 0/1 matrix that zero-dilates (stride) and pads (lo/hi) a single image row.
    dmat = jnp.zeros((w, wp), x_nchw.dtype).at[
        jnp.arange(w), lo + st * jnp.arange(w)].set(1.0)

    x2 = x_nchw.reshape(n, cin, h * w)       # free reshape, stays NCHW

    kern = functools.partial(_decoder_kernel, H=h, W=w, K=k, stride=st, lo=lo, Ho=ho)
    out_wide = pl.pallas_call(
        kern,
        out_shape=jax.ShapeDtypeStruct((n, cout, ho * wp), x_nchw.dtype),
        grid=(n,),
        in_specs=[
            pl.BlockSpec((1, cin, h * w), lambda i: (i, 0, 0)),
            pl.BlockSpec((cmid, cin), lambda i: (0, 0)),
            pl.BlockSpec((cmid, 1), lambda i: (0, 0)),
            pl.BlockSpec((cmid, 1), lambda i: (0, 0)),
            pl.BlockSpec((w, wp), lambda i: (0, 0)),
            pl.BlockSpec((cmid, k * k * cmid), lambda i: (0, 0)),
            pl.BlockSpec((cmid, 1), lambda i: (0, 0)),
            pl.BlockSpec((cmid, 1), lambda i: (0, 0)),
            pl.BlockSpec((cout, cmid), lambda i: (0, 0)),
            pl.BlockSpec((cout, 1), lambda i: (0, 0)),
            pl.BlockSpec((cout, 1), lambda i: (0, 0)),
        ],
        out_specs=pl.BlockSpec((1, cout, ho * wp), lambda i: (i, 0, 0)),
        scratch_shapes=[
            pltpu.VMEM((cmid, hp * wp + k - 1), jnp.float32),   # dilated+padded image
            pltpu.VMEM((k * k * cmid, ho * wp), jnp.float32),   # im2col matrix
        ],
        compiler_params=pltpu.CompilerParams(
            dimension_semantics=("parallel",)),
    )(x2, w1t, s1.reshape(cmid, 1), b1.reshape(cmid, 1), dmat, wdm,
      sd.reshape(cmid, 1), bd.reshape(cmid, 1), w2t,
      s2.reshape(cout, 1), b2.reshape(cout, 1))

    # Kernel output rows have stride Wp (K-1 junk columns per row); drop them.
    out = out_wide.reshape(n, cout, ho, wp)[:, :, :, :wo]
    return out


def decoder_reference(x_nchw, params, *, kernel_size, stride, padding, output_padding):
    """Pure-JAX reference (lax convs) for correctness checking."""
    dn = ('NHWC', 'HWIO', 'NHWC')
    prec = lax.Precision.HIGHEST
    x = jnp.transpose(x_nchw, (0, 2, 3, 1))
    cin = x.shape[-1]
    cmid = params['w1'].shape[1]
    cout = params['w2'].shape[1]

    s1, b1 = fold_bn(params['bn1_gamma'], params['bn1_beta'],
                     params['bn1_mean'], params['bn1_var'])
    sd, bd = fold_bn(params['bnd_gamma'], params['bnd_beta'],
                     params['bnd_mean'], params['bnd_var'])
    s2, b2 = fold_bn(params['bn2_gamma'], params['bn2_beta'],
                     params['bn2_mean'], params['bn2_var'])

    y = lax.conv_general_dilated(x, params['w1'].reshape(1, 1, cin, cmid),
                                 (1, 1), 'VALID', dimension_numbers=dn, precision=prec)
    y = jnp.maximum(y * s1 + b1, 0.0)

    k, st, p, op = kernel_size, stride, padding, output_padding
    lo, hi = k - 1 - p, k - 1 - p + op
    w_conv = jnp.transpose(params['wd'][:, :, ::-1, ::-1], (2, 3, 0, 1))
    y = lax.conv_general_dilated(y, w_conv, (1, 1), [(lo, hi), (lo, hi)],
                                 lhs_dilation=(st, st), dimension_numbers=dn,
                                 precision=prec)
    y = jnp.maximum(y * sd + bd, 0.0)

    y = lax.conv_general_dilated(y, params['w2'].reshape(1, 1, cmid, cout),
                                 (1, 1), 'VALID', dimension_numbers=dn, precision=prec)
    y = jnp.maximum(y * s2 + b2, 0.0)
    return jnp.transpose(y, (0, 3, 1, 2))


# ----------------------------------- main ----------------------------------- #

if __name__ == "__main__":
    in_planes, out_planes = 16, 8
    kernel_size, stride, padding, output_padding = 3, 2, 1, 1
    n, hgt, wid = 2, 16, 16
    cmid = in_planes // 4

    key = jax.random.PRNGKey(0)
    ks = jax.random.split(key, 16)

    def bn_params(k0, k1, k2, k3, c):
        return (1.0 + 0.1 * jax.random.normal(k0, (c,), jnp.float32),   # gamma
                0.1 * jax.random.normal(k1, (c,), jnp.float32),         # beta
                0.1 * jax.random.normal(k2, (c,), jnp.float32),         # running_mean
                jnp.abs(1.0 + 0.1 * jax.random.normal(k3, (c,), jnp.float32)))  # var

    g1, be1, m1, v1 = bn_params(ks[3], ks[4], ks[5], ks[6], cmid)
    gd, bed, md, vd = bn_params(ks[7], ks[8], ks[9], ks[10], cmid)
    g2, be2, m2, v2 = bn_params(ks[11], ks[12], ks[13], ks[14], out_planes)

    params = {
        'w1': 0.1 * jax.random.normal(ks[0], (in_planes, cmid), jnp.float32),
        'wd': 0.1 * jax.random.normal(ks[1], (cmid, cmid, kernel_size, kernel_size),
                                      jnp.float32),
        'w2': 0.1 * jax.random.normal(ks[2], (cmid, out_planes), jnp.float32),
        'bn1_gamma': g1, 'bn1_beta': be1, 'bn1_mean': m1, 'bn1_var': v1,
        'bnd_gamma': gd, 'bnd_beta': bed, 'bnd_mean': md, 'bnd_var': vd,
        'bn2_gamma': g2, 'bn2_beta': be2, 'bn2_mean': m2, 'bn2_var': v2,
    }
    x = jax.random.normal(ks[15], (n, in_planes, hgt, wid), jnp.float32)

    fwd = functools.partial(decoder_forward, kernel_size=kernel_size, stride=stride,
                            padding=padding, output_padding=output_padding)
    out = jax.block_until_ready(jax.jit(fwd)(x, params))

    ref = jax.block_until_ready(
        decoder_reference(x, params, kernel_size=kernel_size, stride=stride,
                          padding=padding, output_padding=output_padding))

    h_out = (hgt - 1) * stride - 2 * padding + kernel_size + output_padding
    assert out.shape == (n, out_planes, h_out, h_out), out.shape
    np.testing.assert_allclose(np.asarray(out), np.asarray(ref), rtol=1e-4, atol=1e-4)
    print("KERNEL_OK")
</pallas_src>

<mosaic_0001>
module attributes {stable_mosaic.version = 11 : i64} {
  func.func @_decoder_kernel(%arg0: i32, %arg1: memref<1x16x256xf32, #tpu.memory_space<vmem>>, %arg2: memref<4x16xf32, #tpu.memory_space<vmem>>, %arg3: memref<4x1xf32, #tpu.memory_space<vmem>>, %arg4: memref<4x1xf32, #tpu.memory_space<vmem>>, %arg5: memref<16x34xf32, #tpu.memory_space<vmem>>, %arg6: memref<4x36xf32, #tpu.memory_space<vmem>>, %arg7: memref<4x1xf32, #tpu.memory_space<vmem>>, %arg8: memref<4x1xf32, #tpu.memory_space<vmem>>, %arg9: memref<8x4xf32, #tpu.memory_space<vmem>>, %arg10: memref<8x1xf32, #tpu.memory_space<vmem>>, %arg11: memref<8x1xf32, #tpu.memory_space<vmem>>, %arg12: memref<1x8x1088xf32, #tpu.memory_space<vmem>>, %arg13: memref<4x1158xf32, #tpu.memory_space<vmem>>, %arg14: memref<36x1088xf32, #tpu.memory_space<vmem>>) attributes {dimension_semantics = [#tpu.dimension_semantics<parallel>], iteration_bounds = array<i64: 2>, scalar_prefetch = 0 : i64, scratch_operands = 2 : i64, tpu.core_type = #tpu.core_type<tc>, window_params = [{transform_indices = @transform_0, window_bounds = array<i64: 1, 16, 256>}, {pipeline_mode = #tpu.pipeline_mode<synchronous>, transform_indices = @transform_1, window_bounds = array<i64: 4, 16>}, {pipeline_mode = #tpu.pipeline_mode<synchronous>, transform_indices = @transform_2, window_bounds = array<i64: 4, 1>}, {pipeline_mode = #tpu.pipeline_mode<synchronous>, transform_indices = @transform_3, window_bounds = array<i64: 4, 1>}, {pipeline_mode = #tpu.pipeline_mode<synchronous>, transform_indices = @transform_4, window_bounds = array<i64: 16, 34>}, {pipeline_mode = #tpu.pipeline_mode<synchronous>, transform_indices = @transform_5, window_bounds = array<i64: 4, 36>}, {pipeline_mode = #tpu.pipeline_mode<synchronous>, transform_indices = @transform_6, window_bounds = array<i64: 4, 1>}, {pipeline_mode = #tpu.pipeline_mode<synchronous>, transform_indices = @transform_7, window_bounds = array<i64: 4, 1>}, {pipeline_mode = #tpu.pipeline_mode<synchronous>, transform_indices = @transform_8, window_bounds = array<i64: 8, 4>}, {pipeline_mode = #tpu.pipeline_mode<synchronous>, transform_indices = @transform_9, window_bounds = array<i64: 8, 1>}, {pipeline_mode = #tpu.pipeline_mode<synchronous>, transform_indices = @transform_10, window_bounds = array<i64: 8, 1>}, {transform_indices = @transform_11, window_bounds = array<i64: 1, 8, 1088>}]} {
    %c0 = arith.constant 0 : index
    %c0_0 = arith.constant 0 : index
    %c0_1 = arith.constant 0 : index
    %0 = vector.load %arg1[%c0, %c0_0, %c0_1] : memref<1x16x256xf32, #tpu.memory_space<vmem>>, vector<1x16x256xf32>
    %1 = vector.shape_cast %0 : vector<1x16x256xf32> to vector<16x256xf32>
    %c0_2 = arith.constant 0 : index
    %c0_3 = arith.constant 0 : index
    %2 = vector.load %arg2[%c0_2, %c0_3] : memref<4x16xf32, #tpu.memory_space<vmem>>, vector<4x16xf32>
    %cst = arith.constant dense<0.000000e+00> : vector<4x256xf32>
    %3 = tpu.matmul %2, %1, %cst {dimension_numbers = #tpu.dot_dimension_numbers<[1], [0], [0], [1], [0, 0, 1, 1], [], []>} : vector<4x16xf32>, vector<16x256xf32>, vector<4x256xf32> -> vector<4x256xf32>
    %c0_4 = arith.constant 0 : index
    %c0_5 = arith.constant 0 : index
    %4 = vector.load %arg3[%c0_4, %c0_5] : memref<4x1xf32, #tpu.memory_space<vmem>>, vector<4x1xf32>
    %5 = vector.broadcast %4 : vector<4x1xf32> to vector<4x256xf32>
    %6 = arith.mulf %3, %5 : vector<4x256xf32>
    %c0_6 = arith.constant 0 : index
    %c0_7 = arith.constant 0 : index
    %7 = vector.load %arg4[%c0_6, %c0_7] : memref<4x1xf32, #tpu.memory_space<vmem>>, vector<4x1xf32>
    %8 = vector.broadcast %7 : vector<4x1xf32> to vector<4x256xf32>
    %9 = arith.addf %6, %8 : vector<4x256xf32>
    %cst_8 = arith.constant 0.000000e+00 : f32
    %10 = vector.broadcast %cst_8 : f32 to vector<4x256xf32>
    %11 = arith.maximumf %9, %10 : vector<4x256xf32>
    %cst_9 = arith.constant 0.000000e+00 : f32
    %12 = vector.broadcast %cst_9 : f32 to vector<4x1158xf32>
    %c0_10 = arith.constant 0 : index
    %c0_11 = arith.constant 0 : index
    %13 = vector.load %arg13[%c0_10, %c0_11] : memref<4x1158xf32, #tpu.memory_space<vmem>>, vector<4x1158xf32>
    tpu.vector_store %arg13[%c0_10, %c0_11], %12 {strides = array<i32>} : memref<4x1158xf32, #tpu.memory_space<vmem>>, vector<4x1158xf32>,
    %c0_12 = arith.constant 0 : index
    %c0_13 = arith.constant 0 : index
    %14 = vector.load %arg5[%c0_12, %c0_13] : memref<16x34xf32, #tpu.memory_space<vmem>>, vector<16x34xf32>
    %15 = vector.extract_strided_slice %11 {offsets = [0, 0], sizes = [4, 16], strides = [1, 1]} : vector<4x256xf32> to vector<4x16xf32>
    %cst_14 = arith.constant dense<0.000000e+00> : vector<4x34xf32>
    %16 = tpu.matmul %15, %14, %cst_14 {dimension_numbers = #tpu.dot_dimension_numbers<[1], [0], [0], [1], [0, 0, 1, 1], [], []>} : vector<4x16xf32>, vector<16x34xf32>, vector<4x34xf32> -> vector<4x34xf32>
    %c0_15 = arith.constant 0 : index
    %c34 = arith.constant 34 : index
    %17 = vector.load %arg13[%c0_15, %c34] : memref<4x1158xf32, #tpu.memory_space<vmem>>, vector<4x34xf32>
    tpu.vector_store %arg13[%c0_15, %c34], %16 {strides = array<i32>} : memref<4x1158xf32, #tpu.memory_space<vmem>>, vector<4x34xf32>,
    %18 = vector.extract_strided_slice %11 {offsets = [0, 16], sizes = [4, 16], strides = [1, 1]} : vector<4x256xf32> to vector<4x16xf32>
    %cst_16 = arith.constant dense<0.000000e+00> : vector<4x34xf32>
    %19 = tpu.matmul %18, %14, %cst_16 {dimension_numbers = #tpu.dot_dimension_numbers<[1], [0], [0], [1], [0, 0, 1, 1], [], []>} : vector<4x16xf32>, vector<16x34xf32>, vector<4x34xf32> -> vector<4x34xf32>
    %c0_17 = arith.constant 0 : index
    %c102 = arith.constant 102 : index
    %20 = vector.load %arg13[%c0_17, %c102] : memref<4x1158xf32, #tpu.memory_space<vmem>>, vector<4x34xf32>
    tpu.vector_store %arg13[%c0_17, %c102], %19 {strides = array<i32>} : memref<4x1158xf32, #tpu.memory_space<vmem>>, vector<4x34xf32>,
    %21 = vector.extract_strided_slice %11 {offsets = [0, 32], sizes = [4, 16], strides = [1, 1]} : vector<4x256xf32> to vector<4x16xf32>
    %cst_18 = arith.constant dense<0.000000e+00> : vector<4x34xf32>
    %22 = tpu.matmul %21, %14, %cst_18 {dimension_numbers = #tpu.dot_dimension_numbers<[1], [0], [0], [1], [0, 0, 1, 1], [], []>} : vector<4x16xf32>, vector<16x34xf32>, vector<4x34xf32> -> vector<4x34xf32>
    %c0_19 = arith.constant 0 : index
    %c170 = arith.constant 170 : index
    %23 = vector.load %arg13[%c0_19, %c170] : memref<4x1158xf32, #tpu.memory_space<vmem>>, vector<4x34xf32>
    tpu.vector_store %arg13[%c0_19, %c170], %22 {strides = array<i32>} : memref<4x1158xf32, #tpu.memory_space<vmem>>, vector<4x34xf32>,
    %24 = vector.extract_strided_slice %11 {offsets = [0, 48], sizes = [4, 16], strides = [1, 1]} : vector<4x256xf32> to vector<4x16xf32>
    %cst_20 = arith.constant dense<0.000000e+00> : vector<4x34xf32>
    %25 = tpu.matmul %24, %14, %cst_20 {dimension_numbers = #tpu.dot_dimension_numbers<[1], [0], [0], [1], [0, 0, 1, 1], [], []>} : vector<4x16xf32>, vector<16x34xf32>, vector<4x34xf32> -> vector<4x34xf32>
    %c0_21 = arith.constant 0 : index
    %c238 = arith.constant 238 : index
    %26 = vector.load %arg13[%c0_21, %c238] : memref<4x1158xf32, #tpu.memory_space<vmem>>, vector<4x34xf32>
    tpu.vector_store %arg13[%c0_21, %c238], %25 {strides = array<i32>} : memref<4x1158xf32, #tpu.memory_space<vmem>>, vector<4x34xf32>,
    %27 = vector.extract_strided_slice %11 {offsets = [0, 64], sizes = [4, 16], strides = [1, 1]} : vector<4x256xf32> to vector<4x16xf32>
    %cst_22 = arith.constant dense<0.000000e+00> : vector<4x34xf32>
    %28 = tpu.matmul %27, %14, %cst_22 {dimension_numbers = #tpu.dot_dimension_numbers<[1], [0], [0], [1], [0, 0, 1, 1], [], []>} : vector<4x16xf32>, vector<16x34xf32>, vector<4x34xf32> -> vector<4x34xf32>
    %c0_23 = arith.constant 0 : index
    %c306 = arith.constant 306 : index
    %29 = vector.load %arg13[%c0_23, %c306] : memref<4x1158xf32, #tpu.memory_space<vmem>>, vector<4x34xf32>
    tpu.vector_store %arg13[%c0_23, %c306], %28 {strides = array<i32>} : memref<4x1158xf32, #tpu.memory_space<vmem>>, vector<4x34xf32>,
    %30 = vector.extract_strided_slice %11 {offsets = [0, 80], sizes = [4, 16], strides = [1, 1]} : vector<4x256xf32> to vector<4x16xf32>
    %cst_24 = arith.constant dense<0.000000e+00> : vector<4x34xf32>
    %31 = tpu.matmul %30, %14, %cst_24 {dimension_numbers = #tpu.dot_dimension_numbers<[1], [0], [0], [1], [0, 0, 1, 1], [], []>} : vector<4x16xf32>, vector<16x34xf32>, vector<4x34xf32> -> vector<4x34xf32>
    %c0_25 = arith.constant 0 : index
    %c374 = arith.constant 374 : index
    %32 = vector.load %arg13[%c0_25, %c374] : memref<4x1158xf32, #tpu.memory_space<vmem>>, vector<4x34xf32>
    tpu.vector_store %arg13[%c0_25, %c374], %31 {strides = array<i32>} : memref<4x1158xf32, #tpu.memory_space<vmem>>, vector<4x34xf32>,
    %33 = vector.extract_strided_slice %11 {offsets = [0, 96], sizes = [4, 16], strides = [1, 1]} : vector<4x256xf32> to vector<4x16xf32>
    %cst_26 = arith.constant dense<0.000000e+00> : vector<4x34xf32>
    %34 = tpu.matmul %33, %14, %cst_26 {dimension_numbers = #tpu.dot_dimension_numbers<[1], [0], [0], [1], [0, 0, 1, 1], [], []>} : vector<4x16xf32>, vector<16x34xf32>, vector<4x34xf32> -> vector<4x34xf32>
    %c0_27 = arith.constant 0 : index
    %c442 = arith.constant 442 : index
    %35 = vector.load %arg13[%c0_27, %c442] : memref<4x1158xf32, #tpu.memory_space<vmem>>, vector<4x34xf32>
    tpu.vector_store %arg13[%c0_27, %c442], %34 {strides = array<i32>} : memref<4x1158xf32, #tpu.memory_space<vmem>>, vector<4x34xf32>,
    %36 = vector.extract_strided_slice %11 {offsets = [0, 112], sizes = [4, 16], strides = [1, 1]} : vector<4x256xf32> to vector<4x16xf32>
    %cst_28 = arith.constant dense<0.000000e+00> : vector<4x34xf32>
    %37 = tpu.matmul %36, %14, %cst_28 {dimension_numbers = #tpu.dot_dimension_numbers<[1], [0], [0], [1], [0, 0, 1, 1], [], []>} : vector<4x16xf32>, vector<16x34xf32>, vector<4x34xf32> -> vector<4x34xf32>
    %c0_29 = arith.constant 0 : index
    %c510 = arith.constant 510 : index
    %38 = vector.load %arg13[%c0_29, %c510] : memref<4x1158xf32, #tpu.memory_space<vmem>>, vector<4x34xf32>
    tpu.vector_store %arg13[%c0_29, %c510], %37 {strides = array<i32>} : memref<4x1158xf32, #tpu.memory_space<vmem>>, vector<4x34xf32>,
    %39 = vector.extract_strided_slice %11 {offsets = [0, 128], sizes = [4, 16], strides = [1, 1]} : vector<4x256xf32> to vector<4x16xf32>
    %cst_30 = arith.constant dense<0.000000e+00> : vector<4x34xf32>
    %40 = tpu.matmul %39, %14, %cst_30 {dimension_numbers = #tpu.dot_dimension_numbers<[1], [0], [0], [1], [0, 0, 1, 1], [], []>} : vector<4x16xf32>, vector<16x34xf32>, vector<4x34xf32> -> vector<4x34xf32>
    %c0_31 = arith.constant 0 : index
    %c578 = arith.constant 578 : index
    %41 = vector.load %arg13[%c0_31, %c578] : memref<4x1158xf32, #tpu.memory_space<vmem>>, vector<4x34xf32>
    tpu.vector_store %arg13[%c0_31, %c578], %40 {strides = array<i32>} : memref<4x1158xf32, #tpu.memory_space<vmem>>, vector<4x34xf32>,
    %42 = vector.extract_strided_slice %11 {offsets = [0, 144], sizes = [4, 16], strides = [1, 1]} : vector<4x256xf32> to vector<4x16xf32>
    %cst_32 = arith.constant dense<0.000000e+00> : vector<4x34xf32>
    %43 = tpu.matmul %42, %14, %cst_32 {dimension_numbers = #tpu.dot_dimension_numbers<[1], [0], [0], [1], [0, 0, 1, 1], [], []>} : vector<4x16xf32>, vector<16x34xf32>, vector<4x34xf32> -> vector<4x34xf32>
    %c0_33 = arith.constant 0 : index
    %c646 = arith.constant 646 : index
    %44 = vector.load %arg13[%c0_33, %c646] : memref<4x1158xf32, #tpu.memory_space<vmem>>, vector<4x34xf32>
    tpu.vector_store %arg13[%c0_33, %c646], %43 {strides = array<i32>} : memref<4x1158xf32, #tpu.memory_space<vmem>>, vector<4x34xf32>,
    %45 = vector.extract_strided_slice %11 {offsets = [0, 160], sizes = [4, 16], strides = [1, 1]} : vector<4x256xf32> to vector<4x16xf32>
    %cst_34 = arith.constant dense<0.000000e+00> : vector<4x34xf32>
    %46 = tpu.matmul %45, %14, %cst_34 {dimension_numbers = #tpu.dot_dimension_numbers<[1], [0], [0], [1], [0, 0, 1, 1], [], []>} : vector<4x16xf32>, vector<16x34xf32>, vector<4x34xf32> -> vector<4x34xf32>
    %c0_35 = arith.constant 0 : index
    %c714 = arith.constant 714 : index
    %47 = vector.load %arg13[%c0_35, %c714] : memref<4x1158xf32, #tpu.memory_space<vmem>>, vector<4x34xf32>
    tpu.vector_store %arg13[%c0_35, %c714], %46 {strides = array<i32>} : memref<4x1158xf32, #tpu.memory_space<vmem>>, vector<4x34xf32>,
    %48 = vector.extract_strided_slice %11 {offsets = [0, 176], sizes = [4, 16], strides = [1, 1]} : vector<4x256xf32> to vector<4x16xf32>
    %cst_36 = arith.constant dense<0.000000e+00> : vector<4x34xf32>
    %49 = tpu.matmul %48, %14, %cst_36 {dimension_numbers = #tpu.dot_dimension_numbers<[1], [0], [0], [1], [0, 0, 1, 1], [], []>} : vector<4x16xf32>, vector<16x34xf32>, vector<4x34xf32> -> vector<4x34xf32>
    %c0_37 = arith.constant 0 : index
    %c782 = arith.constant 782 : index
    %50 = vector.load %arg13[%c0_37, %c782] : memref<4x1158xf32, #tpu.memory_space<vmem>>, vector<4x34xf32>
    tpu.vector_store %arg13[%c0_37, %c782], %49 {strides = array<i32>} : memref<4x1158xf32, #tpu.memory_space<vmem>>, vector<4x34xf32>,
    %51 = vector.extract_strided_slice %11 {offsets = [0, 192], sizes = [4, 16], strides = [1, 1]} : vector<4x256xf32> to vector<4x16xf32>
    %cst_38 = arith.constant dense<0.000000e+00> : vector<4x34xf32>
    %52 = tpu.matmul %51, %14, %cst_38 {dimension_numbers = #tpu.dot_dimension_numbers<[1], [0], [0], [1], [0, 0, 1, 1], [], []>} : vector<4x16xf32>, vector<16x34xf32>, vector<4x34xf32> -> vector<4x34xf32>
    %c0_39 = arith.constant 0 : index
    %c850 = arith.constant 850 : index
    %53 = vector.load %arg13[%c0_39, %c850] : memref<4x1158xf32, #tpu.memory_space<vmem>>, vector<4x34xf32>
    tpu.vector_store %arg13[%c0_39, %c850], %52 {strides = array<i32>} : memref<4x1158xf32, #tpu.memory_space<vmem>>, vector<4x34xf32>,
    %54 = vector.extract_strided_slice %11 {offsets = [0, 208], sizes = [4, 16], strides = [1, 1]} : vector<4x256xf32> to vector<4x16xf32>
    %cst_40 = arith.constant dense<0.000000e+00> : vector<4x34xf32>
    %55 = tpu.matmul %54, %14, %cst_40 {dimension_numbers = #tpu.dot_dimension_numbers<[1], [0], [0], [1], [0, 0, 1, 1], [], []>} : vector<4x16xf32>, vector<16x34xf32>, vector<4x34xf32> -> vector<4x34xf32>
    %c0_41 = arith.constant 0 : index
    %c918 = arith.constant 918 : index
    %56 = vector.load %arg13[%c0_41, %c918] : memref<4x1158xf32, #tpu.memory_space<vmem>>, vector<4x34xf32>
    tpu.vector_store %arg13[%c0_41, %c918], %55 {strides = array<i32>} : memref<4x1158xf32, #tpu.memory_space<vmem>>, vector<4x34xf32>,
    %57 = vector.extract_strided_slice %11 {offsets = [0, 224], sizes = [4, 16], strides = [1, 1]} : vector<4x256xf32> to vector<4x16xf32>
    %cst_42 = arith.constant dense<0.000000e+00> : vector<4x34xf32>
    %58 = tpu.matmul %57, %14, %cst_42 {dimension_numbers = #tpu.dot_dimension_numbers<[1], [0], [0], [1], [0, 0, 1, 1], [], []>} : vector<4x16xf32>, vector<16x34xf32>, vector<4x34xf32> -> vector<4x34xf32>
    %c0_43 = arith.constant 0 : index
    %c986 = arith.constant 986 : index
    %59 = vector.load %arg13[%c0_43, %c986] : memref<4x1158xf32, #tpu.memory_space<vmem>>, vector<4x34xf32>
    tpu.vector_store %arg13[%c0_43, %c986], %58 {strides = array<i32>} : memref<4x1158xf32, #tpu.memory_space<vmem>>, vector<4x34xf32>,
    %60 = vector.extract_strided_slice %11 {offsets = [0, 240], sizes = [4, 16], strides = [1, 1]} : vector<4x256xf32> to vector<4x16xf32>
    %cst_44 = arith.constant dense<0.000000e+00> : vector<4x34xf32>
    %61 = tpu.matmul %60, %14, %cst_44 {dimension_numbers = #tpu.dot_dimension_numbers<[1], [0], [0], [1], [0, 0, 1, 1], [], []>} : vector<4x16xf32>, vector<16x34xf32>, vector<4x34xf32> -> vector<4x34xf32>
    %c0_45 = arith.constant 0 : index
    %c1054 = arith.constant 1054 : index
    %62 = vector.load %arg13[%c0_45, %c1054] : memref<4x1158xf32, #tpu.memory_space<vmem>>, vector<4x34xf32>
    tpu.vector_store %arg13[%c0_45, %c1054], %61 {strides = array<i32>} : memref<4x1158xf32, #tpu.memory_space<vmem>>, vector<4x34xf32>,
    %c0_46 = arith.constant 0 : index
    %c0_47 = arith.constant 0 : index
    %63 = vector.load %arg13[%c0_46, %c0_47] : memref<4x1158xf32, #tpu.memory_space<vmem>>, vector<4x1088xf32>
    %c0_48 = arith.constant 0 : index
    %c0_49 = arith.constant 0 : index
    %64 = vector.load %arg14[%c0_48, %c0_49] : memref<36x1088xf32, #tpu.memory_space<vmem>>, vector<4x1088xf32>
    tpu.vector_store %arg14[%c0_48, %c0_49], %63 {strides = array<i32>} : memref<36x1088xf32, #tpu.memory_space<vmem>>, vector<4x1088xf32>,
    %c0_50 = arith.constant 0 : index
    %c1 = arith.constant 1 : index
    %65 = vector.load %arg13[%c0_50, %c1] : memref<4x1158xf32, #tpu.memory_space<vmem>>, vector<4x1088xf32>
    %c4 = arith.constant 4 : index
    %c0_51 = arith.constant 0 : index
    %66 = vector.load %arg14[%c4, %c0_51] : memref<36x1088xf32, #tpu.memory_space<vmem>>, vector<4x1088xf32>
    tpu.vector_store %arg14[%c4, %c0_51], %65 {strides = array<i32>} : memref<36x1088xf32, #tpu.memory_space<vmem>>, vector<4x1088xf32>,
    %c0_52 = arith.constant 0 : index
    %c2 = arith.constant 2 : index
    %67 = vector.load %arg13[%c0_52, %c2] : memref<4x1158xf32, #tpu.memory_space<vmem>>, vector<4x1088xf32>
    %c8 = arith.constant 8 : index
    %c0_53 = arith.constant 0 : index
    %68 = vector.load %arg14[%c8, %c0_53] : memref<36x1088xf32, #tpu.memory_space<vmem>>, vector<4x1088xf32>
    tpu.vector_store %arg14[%c8, %c0_53], %67 {strides = array<i32>} : memref<36x1088xf32, #tpu.memory_space<vmem>>, vector<4x1088xf32>,
    %c0_54 = arith.constant 0 : index
    %c34_55 = arith.constant 34 : index
    %69 = vector.load %arg13[%c0_54, %c34_55] : memref<4x1158xf32, #tpu.memory_space<vmem>>, vector<4x1088xf32>
    %c12 = arith.constant 12 : index
    %c0_56 = arith.constant 0 : index
    %70 = vector.load %arg14[%c12, %c0_56] : memref<36x1088xf32, #tpu.memory_space<vmem>>, vector<4x1088xf32>
    tpu.vector_store %arg14[%c12, %c0_56], %69 {strides = array<i32>} : memref<36x1088xf32, #tpu.memory_space<vmem>>, vector<4x1088xf32>,
    %c0_57 = arith.constant 0 : index
    %c35 = arith.constant 35 : index
    %71 = vector.load %arg13[%c0_57, %c35] : memref<4x1158xf32, #tpu.memory_space<vmem>>, vector<4x1088xf32>
    %c16 = arith.constant 16 : index
    %c0_58 = arith.constant 0 : index
    %72 = vector.load %arg14[%c16, %c0_58] : memref<36x1088xf32, #tpu.memory_space<vmem>>, vector<4x1088xf32>
    tpu.vector_store %arg14[%c16, %c0_58], %71 {strides = array<i32>} : memref<36x1088xf32, #tpu.memory_space<vmem>>, vector<4x1088xf32>,
    %c0_59 = arith.constant 0 : index
    %c36 = arith.constant 36 : index
    %73 = vector.load %arg13[%c0_59, %c36] : memref<4x1158xf32, #tpu.memory_space<vmem>>, vector<4x1088xf32>
    %c20 = arith.constant 20 : index
    %c0_60 = arith.constant 0 : index
    %74 = vector.load %arg14[%c20, %c0_60] : memref<36x1088xf32, #tpu.memory_space<vmem>>, vector<4x1088xf32>
    tpu.vector_store %arg14[%c20, %c0_60], %73 {strides = array<i32>} : memref<36x1088xf32, #tpu.memory_space<vmem>>, vector<4x1088xf32>,
    %c0_61 = arith.constant 0 : index
    %c68 = arith.constant 68 : index
    %75 = vector.load %arg13[%c0_61, %c68] : memref<4x1158xf32, #tpu.memory_space<vmem>>, vector<4x1088xf32>
    %c24 = arith.constant 24 : index
    %c0_62 = arith.constant 0 : index
    %76 = vector.load %arg14[%c24, %c0_62] : memref<36x1088xf32, #tpu.memory_space<vmem>>, vector<4x1088xf32>
    tpu.vector_store %arg14[%c24, %c0_62], %75 {strides = array<i32>} : memref<36x1088xf32, #tpu.memory_space<vmem>>, vector<4x1088xf32>,
    %c0_63 = arith.constant 0 : index
    %c69 = arith.constant 69 : index
    %77 = vector.load %arg13[%c0_63, %c69] : memref<4x1158xf32, #tpu.memory_space<vmem>>, vector<4x1088xf32>
    %c28 = arith.constant 28 : index
    %c0_64 = arith.constant 0 : index
    %78 = vector.load %arg14[%c28, %c0_64] : memref<36x1088xf32, #tpu.memory_space<vmem>>, vector<4x1088xf32>
    tpu.vector_store %arg14[%c28, %c0_64], %77 {strides = array<i32>} : memref<36x1088xf32, #tpu.memory_space<vmem>>, vector<4x1088xf32>,
    %c0_65 = arith.constant 0 : index
    %c70 = arith.constant 70 : index
    %79 = vector.load %arg13[%c0_65, %c70] : memref<4x1158xf32, #tpu.memory_space<vmem>>, vector<4x1088xf32>
    %c32 = arith.constant 32 : index
    %c0_66 = arith.constant 0 : index
    %80 = vector.load %arg14[%c32, %c0_66] : memref<36x1088xf32, #tpu.memory_space<vmem>>, vector<4x1088xf32>
    tpu.vector_store %arg14[%c32, %c0_66], %79 {strides = array<i32>} : memref<36x1088xf32, #tpu.memory_space<vmem>>, vector<4x1088xf32>,
    %c0_67 = arith.constant 0 : index
    %c0_68 = arith.constant 0 : index
    %81 = vector.load %arg6[%c0_67, %c0_68] : memref<4x36xf32, #tpu.memory_space<vmem>>, vector<4x36xf32>
    %c0_69 = arith.constant 0 : index
    %c0_70 = arith.constant 0 : index
    %82 = vector.load %arg14[%c0_69, %c0_70] : memref<36x1088xf32, #tpu.memory_space<vmem>>, vector<36x1088xf32>
    %cst_71 = arith.constant dense<0.000000e+00> : vector<4x1088xf32>
    %83 = tpu.matmul %81, %82, %cst_71 {dimension_numbers = #tpu.dot_dimension_numbers<[1], [0], [0], [1], [0, 0, 1, 1], [], []>} : vector<4x36xf32>, vector<36x1088xf32>, vector<4x1088xf32> -> vector<4x1088xf32>
    %c0_72 = arith.constant 0 : index
    %c0_73 = arith.constant 0 : index
    %84 = vector.load %arg7[%c0_72, %c0_73] : memref<4x1xf32, #tpu.memory_space<vmem>>, vector<4x1xf32>
    %85 = vector.broadcast %84 : vector<4x1xf32> to vector<4x1088xf32>
    %86 = arith.mulf %83, %85 : vector<4x1088xf32>
    %c0_74 = arith.constant 0 : index
    %c0_75 = arith.constant 0 : index
    %87 = vector.load %arg8[%c0_74, %c0_75] : memref<4x1xf32, #tpu.memory_space<vmem>>, vector<4x1xf32>
    %88 = vector.broadcast %87 : vector<4x1xf32> to vector<4x1088xf32>
    %89 = arith.addf %86, %88 : vector<4x1088xf32>
    %cst_76 = arith.constant 0.000000e+00 : f32
    %90 = vector.broadcast %cst_76 : f32 to vector<4x1088xf32>
    %91 = arith.maximumf %89, %90 : vector<4x1088xf32>
    %c0_77 = arith.constant 0 : index
    %c0_78 = arith.constant 0 : index
    %92 = vector.load %arg9[%c0_77, %c0_78] : memref<8x4xf32, #tpu.memory_space<vmem>>, vector<8x4xf32>
    %cst_79 = arith.constant dense<0.000000e+00> : vector<8x1088xf32>
    %93 = tpu.matmul %92, %91, %cst_79 {dimension_numbers = #tpu.dot_dimension_numbers<[1], [0], [0], [1], [0, 0, 1, 1], [], []>} : vector<8x4xf32>, vector<4x1088xf32>, vector<8x1088xf32> -> vector<8x1088xf32>
    %c0_80 = arith.constant 0 : index
    %c0_81 = arith.constant 0 : index
    %94 = vector.load %arg10[%c0_80, %c0_81] : memref<8x1xf32, #tpu.memory_space<vmem>>, vector<8x1xf32>
    %95 = vector.broadcast %94 : vector<8x1xf32> to vector<8x1088xf32>
    %96 = arith.mulf %93, %95 : vector<8x1088xf32>
    %c0_82 = arith.constant 0 : index
    %c0_83 = arith.constant 0 : index
    %97 = vector.load %arg11[%c0_82, %c0_83] : memref<8x1xf32, #tpu.memory_space<vmem>>, vector<8x1xf32>
    %98 = vector.broadcast %97 : vector<8x1xf32> to vector<8x1088xf32>
    %99 = arith.addf %96, %98 : vector<8x1088xf32>
    %cst_84 = arith.constant 0.000000e+00 : f32
    %100 = vector.broadcast %cst_84 : f32 to vector<8x1088xf32>
    %101 = arith.maximumf %99, %100 : vector<8x1088xf32>
    %102 = vector.shape_cast %101 : vector<8x1088xf32> to vector<1x8x1088xf32>
    %c0_85 = arith.constant 0 : index
    %c0_86 = arith.constant 0 : index
    %c0_87 = arith.constant 0 : index
    %103 = vector.load %arg12[%c0_85, %c0_86, %c0_87] : memref<1x8x1088xf32, #tpu.memory_space<vmem>>, vector<1x8x1088xf32>
    tpu.vector_store %arg12[%c0_85, %c0_86, %c0_87], %102 {strides = array<i32>} : memref<1x8x1088xf32, #tpu.memory_space<vmem>>, vector<1x8x1088xf32>,
    return
  }
  func.func @transform_0(%arg0: i32) -> (i32, i32, i32) {
    %c0_i32 = arith.constant 0 : i32
    %c0_i32_0 = arith.constant 0 : i32
    %c0_i32_1 = arith.constant 0 : i32
    return %arg0, %c0_i32, %c0_i32_0 : i32, i32, i32
  }
  func.func @transform_1(%arg0: i32) -> (i32, i32) {
    %c0_i32 = arith.constant 0 : i32
    %c0_i32_0 = arith.constant 0 : i32
    %c0_i32_1 = arith.constant 0 : i32
    return %c0_i32, %c0_i32_0 : i32, i32
  }
  func.func @transform_2(%arg0: i32) -> (i32, i32) {
    %c0_i32 = arith.constant 0 : i32
    %c0_i32_0 = arith.constant 0 : i32
    %c0_i32_1 = arith.constant 0 : i32
    return %c0_i32, %c0_i32_0 : i32, i32
  }
  func.func @transform_3(%arg0: i32) -> (i32, i32) {
    %c0_i32 = arith.constant 0 : i32
    %c0_i32_0 = arith.constant 0 : i32
    %c0_i32_1 = arith.constant 0 : i32
    return %c0_i32, %c0_i32_0 : i32, i32
  }
  func.func @transform_4(%arg0: i32) -> (i32, i32) {
    %c0_i32 = arith.constant 0 : i32
    %c0_i32_0 = arith.constant 0 : i32
    %c0_i32_1 = arith.constant 0 : i32
    return %c0_i32, %c0_i32_0 : i32, i32
  }
  func.func @transform_5(%arg0: i32) -> (i32, i32) {
    %c0_i32 = arith.constant 0 : i32
    %c0_i32_0 = arith.constant 0 : i32
    %c0_i32_1 = arith.constant 0 : i32
    return %c0_i32, %c0_i32_0 : i32, i32
  }
  func.func @transform_6(%arg0: i32) -> (i32, i32) {
    %c0_i32 = arith.constant 0 : i32
    %c0_i32_0 = arith.constant 0 : i32
    %c0_i32_1 = arith.constant 0 : i32
    return %c0_i32, %c0_i32_0 : i32, i32
  }
  func.func @transform_7(%arg0: i32) -> (i32, i32) {
    %c0_i32 = arith.constant 0 : i32
    %c0_i32_0 = arith.constant 0 : i32
    %c0_i32_1 = arith.constant 0 : i32
    return %c0_i32, %c0_i32_0 : i32, i32
  }
  func.func @transform_8(%arg0: i32) -> (i32, i32) {
    %c0_i32 = arith.constant 0 : i32
    %c0_i32_0 = arith.constant 0 : i32
    %c0_i32_1 = arith.constant 0 : i32
    return %c0_i32, %c0_i32_0 : i32, i32
  }
  func.func @transform_9(%arg0: i32) -> (i32, i32) {
    %c0_i32 = arith.constant 0 : i32
    %c0_i32_0 = arith.constant 0 : i32
    %c0_i32_1 = arith.constant 0 : i32
    return %c0_i32, %c0_i32_0 : i32, i32
  }
  func.func @transform_10(%arg0: i32) -> (i32, i32) {
    %c0_i32 = arith.constant 0 : i32
    %c0_i32_0 = arith.constant 0 : i32
    %c0_i32_1 = arith.constant 0 : i32
    return %c0_i32, %c0_i32_0 : i32, i32
  }
  func.func @transform_11(%arg0: i32) -> (i32, i32, i32) {
    %c0_i32 = arith.constant 0 : i32
    %c0_i32_0 = arith.constant 0 : i32
    %c0_i32_1 = arith.constant 0 : i32
    return %arg0, %c0_i32, %c0_i32_0 : i32, i32, i32
  }
}

</mosaic_0001>

<bundles_post_ra>
// kernel: decoder_forward.1
= control target key start
LH: loop header
LB: loop body
LE: loop exit
PB: predicated region body
PF: predicated region fallthrough
CT: control target
= control target key end

     0   :  { %s3754_s17 = smov 0   ;;  %s4197_s0 = inlined_call_operand.vmem [shape: f32[2,16,256], index: 0, kind: input, shape index: {}]   ;;  %s4198_s1 = inlined_call_operand.vmem [shape: f32[4,16], index: 1, kind: input, shape index: {}]   ;;  %s4199_s2 = inlined_call_operand.vmem [shape: f32[4,1], index: 2, kind: input, shape index: {}]   ;;  %s4200_s3 = inlined_call_operand.vmem [shape: f32[4,1], index: 3, kind: input, shape index: {}]   ;;  %s4201_s4 = inlined_call_operand.vmem [shape: f32[16,34], index: 4, kind: input, shape index: {}]   ;;  %s4202_s5 = inlined_call_operand.vmem [shape: f32[4,36], index: 5, kind: input, shape index: {}]   ;;  %s4203_s6 = inlined_call_operand.vmem [shape: f32[4,1], index: 6, kind: input, shape index: {}]   ;;  %s4204_s7 = inlined_call_operand.vmem [shape: f32[4,1], index: 7, kind: input, shape index: {}]   ;;  %s4205_s8 = inlined_call_operand.vmem [shape: f32[8,4], index: 8, kind: input, shape index: {}]   ;;  %s4206_s9 = inlined_call_operand.vmem [shape: f32[8,1], index: 9, kind: input, shape index: {}]   ;;  %s4207_s10 = inlined_call_operand.vmem [shape: f32[8,1], index: 10, kind: input, shape index: {}]   ;;  %s4208_s11 = inlined_call_operand.vmem [shape: f32[2,8,1088], index: 11, kind: output, shape index: {}]  }
   0x1 LB: > { %s3267_s18 = sadd.s32 4294967295, %s3659_s17   ;;  %p3271_p0 = scmp.ge.s32.totalorder %s3659_s17, 1  ;;  %s3659_s17 = sphi %s3754_s17, %s21_s17  }
   0x2   : > { %p337_p1 = scmp.lt.s32.totalorder %s3659_s17, 3 }
   0x4   : > { %p338_p2 = pnand %p3271_p0, %p337_p1 }
   0x5   : > { %p377_p3 = scmp.lt.s32.totalorder (!%p338_p2), %s3267_s18, 1  ;;  %v3661_v0 = vmov (!%p338_p2), 0.0   ;;  %v3662_v1 = vmov (!%p338_p2), 0   ;;  %v467_v2 = vld [vmem:[%s4199_s2] sm:$0xf] (!%p338_p2)  ;;  %vm392_vm0 = vcmask (!%p338_p2), 130048  }
   0x6   : > { %341 = sbr.rel (%p338_p2) target bundleno = 1409 (0x581), region = 64  ;;  %460 = vmatprep.mubr.f32.mxu0 (!%p338_p2), %v3661_v0  ;;  %485 = vst [vmem:[#allocation2] sm:$0xff] (!%p338_p2), %v3661_v0  ;;  %486 = vst [vmem:[#allocation2 + $0x8] sm:$0xff] (!%p338_p2), %v3661_v0  ;;  %3641 = vset.pattern.permute.xlu0 (!%p338_p2), %v3662_v1  ;;  %v475_v3 = vld [vmem:[%s4200_s3] sm:$0xf] (!%p338_p2)  ;;  %v494_v12 = vld [vmem:[%s4201_s4 + $0x8] sm:$0xff] (!%p338_p2) }
   0x7   : > { %487 = vst [vmem:[#allocation2 + $0x10] sm:$0xff] (!%p338_p2), %v3661_v0  ;;  %488 = vst [vmem:[#allocation2 + $0x18] sm:$0xff] (!%p338_p2), %v3661_v0  ;;  %470 = vperm.xlu0 (!%p338_p2), %3641, %v467_v2   ;;  %3642 = vset.pattern.permute.xlu1 (!%p338_p2), %v3662_v1  ;;  %v391_v10 = vld [vmem:[%s4198_s1] sm:$0xf] (!%p338_p2)  ;;  %v3663_v14 = vmov (!%p338_p2), 0.0|0.0   ;;  %vm3664_vm1 = vmmov (!%p338_p2), 0  }
   0x8   : > { %v493_v11 = vld [vmem:[%s4201_s4] sm:$0xff] (!%p338_p2)  ;;  %3513 = vmatprep.subr.bf16.mxu1 (!%p338_p2), %v3663_v14  ;;  %3383 = vmatprep.mubr.msk.f32.mxu1 (!%p338_p2), %vm3664_vm1, %v3661_v0  ;;  %s3665_s14 = smov (!%p338_p2), 80   ;;  %s3666_s15 = smov (!%p338_p2), 112   ;;  %vm572_vm2 = vcmask (!%p338_p2), 552208   ;;  %vm489_vm3 = vcmask (!%p338_p2), 1043456   ;;  %vm490_vm4 = vcmask (!%p338_p2), 48132  }
   0x9   : > { %v3789_v13 = vpack.c.bf16 (!%p338_p2), %v494_v12, %v493_v11  ;;  %s3667_s16 = smov (!%p338_p2), 48   ;;  %s3668_s19 = smov (!%p338_p2), 96   ;;  %vm491_vm5 = vmor (!%p338_p2), %vm490_vm4, %vm489_vm3  ;;  %vm655_vm6 = vcmask (!%p338_p2), 1044272   ;;  %vm656_vm7 = vcmask (!%p338_p2), 64516   ;;  %vm652_vm8 = vcmask (!%p338_p2), 834560  }
   0xa   : > { %s3669_s20 = smov (!%p338_p2), 16   ;;  %s3670_s21 = smov (!%p338_p2), 64   ;;  %492 = vst.msk [vmem:[#allocation2 + $0x20] sm:$0xff] (!%p338_p2), %vm491_vm5, %v3661_v0  ;;  %vm657_vm9 = vmor (!%p338_p2), %vm656_vm7, %vm655_vm6  ;;  %vm737_vm10 = vcmask (!%p338_p2), 617808   ;;  %vm820_vm11 = vcmask (!%p338_p2), 1044336   ;;  %vm821_vm12 = vcmask (!%p338_p2), 130052  }
   0xb   : > { %478 = vperm.xlu0 (!%p338_p2), %3641, %v475_v3   ;;  %3515 = vmatpush3.bf16.msra.mxu1 (!%p338_p2), %v3789_v13  ;;  %s3671_s22 = smov (!%p338_p2), 32   ;;  %s3673_s24 = smov (!%p338_p2), 102   ;;  %vm817_vm13 = vcmask (!%p338_p2), 900096   ;;  %vm822_vm14 = vmor (!%p338_p2), %vm821_vm12, %vm820_vm11  ;;  %vm902_vm15 = vcmask (!%p338_p2), 683408   ;;  %vm982_vm4 = vcmask (!%p338_p2), 965632   ;;  %vm1067_vm6 = vcmask (!%p338_p2), 749008  }
   0xc   : > { %3519 = vmatprep.subr.bf16.mxu1 (!%p338_p2), %v3663_v14  ;;  %s3674_s25 = smov (!%p338_p2), 110   ;;  %s3676_s27 = smov (!%p338_p2), 118   ;;  %vm1150_vm7 = vcmask (!%p338_p2), 1044464   ;;  %vm1311_vm11 = vcmask (!%p338_p2), 322608   ;;  %vm1231_vm12 = vcmask (!%p338_p2), 814608  }
   0xd   : > { %s4210_s18 = smov (!%p377_p3, %s3267_s18), 1  ;;  %s3677_s28 = smov 50  }
   0xe   : > { %s3322_s23 = sshll.u32 %s4210_s18, 5  ;;  %s3678_s29 = smov 126  }
   0xf   : > { %s381_s26 = scalar_lea.vmem %s4197_s0, %s3322_s23  ;;  %s3672_s23 = smov 34  }
  0x10   : > { %v388_v4 = vld [vmem:[%s381_s26 + $0x8] sm:$0xff]  ;;  %v390_v5 = vld [vmem:[%s381_s26 + $0x18] sm:$0xff]  ;;  %v387_v6 = vld [vmem:[%s381_s26] sm:$0xff]  ;;  %s3679_s30 = smov 58   ;;  %s3680_s12 = smov 6  }
  0x11   : > { %v3509_v7 = vpack.c.bf16 %v390_v5, %v388_v4  ;;  %v389_v8 = vld [vmem:[%s381_s26 + $0x10] sm:$0xff]  ;;  %s3675_s26 = smov 42   ;;  %s3681_s13 = smov 66  }
  0x12   : > { %v3511_v9 = vpack.c.bf16 %v389_v8, %v387_v6 }
  0x13   : > { %3510 = vmatprep.subr.bf16.mxu0 %v3509_v7 }
  0x14   : > { %3512 = vmatpush1.bf16.msra.mxu0 %v3511_v9 }
  0x15   : > { %3516 = vmatprep.subr.bf16.mxu0 %v3663_v14 }
  0x17   : > { %3275 = vmatmul.mubr.msk.f32.vlgmr.msra.gmra.mrb[0].mxu0 %vm392_vm0, %v391_v10 }
  0x18   : > { %3518 = vmatpush3.bf16.msra.mxu0 %v3789_v13  ;;  %3390 = vmatprep.mubr.msk.f32.mxu0 %vm3664_vm1, %v3661_v0 }
  0x19   : > { %3522 = vmatprep.subr.bf16.mxu0 %v3663_v14 }
  0x86   : > { %v471_v15 = vpop.permute.xlu0 %470 }
  0x8a   : > { %v479_v19 = vpop.permute.xlu0 %478 }
  0xea   : > { %v462_v16 = vpop.f32.mrb[0].mxu0 }
  0xeb   : > { %v473_v17 = vmul.f32 %v471_v15, %v462_v16  ;;  %v464_v18 = vpop.f32.mrb[1].mxu0 }
  0xec   : > { %v474_v22 = vmul.f32 %v471_v15, %v464_v18 }
  0xed   : > { %v481_v20 = vadd.f32 %v479_v19, %v473_v17 }
  0xee   : > { %v482_v23 = vadd.f32 %v479_v19, %v474_v22 }
  0xef   : > { %v483_v21 = vmax.f32 %v481_v20, 0.0 }
  0xf0   : > { %v484_v24 = vmax.f32 %v482_v23, 0.0 }
  0xf1   : > { %739 = vrot.lane.b32.xlu0 %v483_v21, %s3665_s14  ;;  %574 = vrot.lane.b32.xlu1 %v483_v21, %s3666_s15 }
  0xf2   : > { %3384 = vmatmul.mubr.msk.f32.vlgmr.msra.gmra.mrb[0].mxu1 %vm392_vm0, %v483_v21 }
  0xf3   : > { %3521 = vmatpush3.bf16.msra.mxu1 %v3789_v13  ;;  %3397 = vmatprep.mubr.msk.f32.mxu1 %vm3664_vm1, %v3661_v0 }
  0xf4   : > { %3525 = vmatprep.subr.bf16.mxu1 %v3663_v14 }
  0xf5   : > { %904 = vrot.lane.b32.xlu0 %v483_v21, %s3667_s16  ;;  %659 = vrot.lane.b32.xlu1 %v483_v21, %s3668_s19 }
  0xf9   : > { %1069 = vrot.lane.b32.xlu0 %v483_v21, %s3669_s20  ;;  %824 = vrot.lane.b32.xlu1 %v483_v21, %s3670_s21 }
  0xfd   : > { %989 = vrot.lane.b32.xlu1 %v483_v21, %s3671_s22  ;;  %1313 = vrot.lane.b32.xlu0 %v484_v24, %s3668_s19  ;;  %s3685_s19 = smov 82  }
 0x101   : > { %1473 = vrot.lane.b32.xlu0 %v484_v24, %s3670_s21  ;;  %1233 = vrot.lane.b32.xlu1 %v484_v24, %s3666_s15  ;;  %s3683_s15 = smov 74   ;;  %s3687_s21 = smov 90  }
 0x105   : > { %1633 = vrot.lane.b32.xlu0 %v484_v24, %s3671_s22  ;;  %1393 = vrot.lane.b32.xlu1 %v484_v24, %s3665_s14  ;;  %s3682_s14 = smov 14   ;;  %s3688_s22 = smov 127  }
 0x109   : > { %1553 = vrot.lane.b32.xlu1 %v484_v24, %s3667_s16  ;;  %s3684_s16 = smov 22  }
 0x10d   : > { %1713 = vrot.lane.b32.xlu1 %v484_v24, %s3669_s20  ;;  %s3686_s20 = smov 30  }
 0x163   : > { %v740_v25 = vpop.permute.xlu0 %739  ;;  %v575_v26 = vpop.permute.xlu1 %574 }
 0x164   : > { %3391 = vmatmul.mubr.msk.f32.vlgmr.msra.gmra.mrb[2].mxu0 %vm392_vm0, %v575_v26 }
 0x165   : > { %3524 = vmatpush3.bf16.msra.mxu0 %v3789_v13  ;;  %3404 = vmatprep.mubr.msk.f32.mxu0 %vm3664_vm1, %v3661_v0 }
 0x166   : > { %3528 = vmatprep.subr.bf16.mxu0 %v3663_v14 }
 0x167   : > { %v905_v27 = vpop.permute.xlu0 %904  ;;  %v660_v28 = vpop.permute.xlu1 %659 }
 0x168   : > { %3398 = vmatmul.mubr.msk.f32.vlgmr.msra.gmra.mrb[2].mxu1 %vm392_vm0, %v660_v28  ;;  %3405 = vmatmul.mubr.msk.f32.vlgmr.msra.gmra.mrb[4].mxu0 %vm392_vm0, %v740_v25 }
 0x169   : > { %3527 = vmatpush3.bf16.msra.mxu1 %v3789_v13  ;;  %3530 = vmatpush3.bf16.msra.mxu0 %v3789_v13 }
 0x16a   : > { %3418 = vmatprep.mubr.msk.f32.mxu0 %vm3664_vm1, %v3661_v0  ;;  %3411 = vmatprep.mubr.msk.f32.mxu1 %vm3664_vm1, %v3661_v0 }
 0x16b   : > { %v825_v29 = vpop.permute.xlu1 %824  ;;  %3531 = vmatprep.subr.bf16.mxu1 %v3663_v14  ;;  %3534 = vmatprep.subr.bf16.mxu0 %v3663_v14  ;;  %v1070_v30 = vpop.permute.xlu0 %1069 }
 0x16c   : > { %3412 = vmatmul.mubr.msk.f32.vlgmr.msra.gmra.mrb[4].mxu1 %vm392_vm0, %v825_v29  ;;  %3419 = vmatmul.mubr.msk.f32.vlgmr.msra.gmra.mrb[6].mxu0 %vm392_vm0, %v905_v27 }
 0x16d   : > { %3533 = vmatpush3.bf16.msra.mxu1 %v3789_v13  ;;  %3536 = vmatpush3.bf16.msra.mxu0 %v3789_v13 }
 0x16e   : > { %3432 = vmatprep.mubr.msk.f32.mxu0 %vm3664_vm1, %v3661_v0  ;;  %3425 = vmatprep.mubr.msk.f32.mxu1 %vm3664_vm1, %v3661_v0 }
 0x16f   : > { %v990_v31 = vpop.permute.xlu1 %989  ;;  %3537 = vmatprep.subr.bf16.mxu1 %v3663_v14  ;;  %3540 = vmatprep.subr.bf16.mxu0 %v3663_v14  ;;  %v1314_v32 = vpop.permute.xlu0 %1313 }
 0x170   : > { %3426 = vmatmul.mubr.msk.f32.vlgmr.msra.gmra.mrb[6].mxu1 %vm392_vm0, %v990_v31  ;;  %3433 = vmatmul.mubr.msk.f32.vlgmr.msra.gmra.mrb[8].mxu0 %vm392_vm0, %v1070_v30 }
 0x171   : > { %3539 = vmatpush3.bf16.msra.mxu1 %v3789_v13  ;;  %3542 = vmatpush3.bf16.msra.mxu0 %v3789_v13 }
 0x172   : > { %3439 = vmatprep.mubr.msk.f32.mxu1 %vm3664_vm1, %v3661_v0  ;;  %3446 = vmatprep.mubr.msk.f32.mxu0 %vm3664_vm1, %v3661_v0 }
 0x173   : > { %v1234_v33 = vpop.permute.xlu1 %1233  ;;  %3543 = vmatprep.subr.bf16.mxu1 %v3663_v14  ;;  %3546 = vmatprep.subr.bf16.mxu0 %v3663_v14  ;;  %v1474_v35 = vpop.permute.xlu0 %1473 }
 0x174   : > { %3440 = vmatmul.mubr.msk.f32.vlgmr.msra.gmra.mrb[8].mxu1 %vm392_vm0, %v484_v24  ;;  %3447 = vmatmul.mubr.msk.f32.vlgmr.msra.gmra.mrb[10].mxu0 %vm392_vm0, %v1234_v33 }
 0x175   : > { %3545 = vmatpush3.bf16.msra.mxu1 %v3789_v13  ;;  %3548 = vmatpush3.bf16.msra.mxu0 %v3789_v13 }
 0x176   : > { %3460 = vmatprep.mubr.msk.f32.mxu0 %vm3664_vm1, %v3661_v0  ;;  %3453 = vmatprep.mubr.msk.f32.mxu1 %vm3664_vm1, %v3661_v0 }
 0x177   : > { %v1394_v34 = vpop.permute.xlu1 %1393  ;;  %3549 = vmatprep.subr.bf16.mxu1 %v3663_v14  ;;  %3552 = vmatprep.subr.bf16.mxu0 %v3663_v14  ;;  %v1634_v37 = vpop.permute.xlu0 %1633 }
 0x178   : > { %3454 = vmatmul.mubr.msk.f32.vlgmr.msra.gmra.mrb[10].mxu1 %vm392_vm0, %v1314_v32  ;;  %3461 = vmatmul.mubr.msk.f32.vlgmr.msra.gmra.mrb[12].mxu0 %vm392_vm0, %v1394_v34 }
 0x179   : > { %3551 = vmatpush3.bf16.msra.mxu1 %v3789_v13  ;;  %3554 = vmatpush3.bf16.msra.mxu0 %v3789_v13 }
 0x17a   : > { %3474 = vmatprep.mubr.msk.f32.mxu0 %vm3664_vm1, %v3661_v0  ;;  %3467 = vmatprep.mubr.msk.f32.mxu1 %vm3664_vm1, %v3661_v0 }
 0x17b   : > { %v1554_v36 = vpop.permute.xlu1 %1553  ;;  %3555 = vmatprep.subr.bf16.mxu1 %v3663_v14  ;;  %3558 = vmatprep.subr.bf16.mxu0 %v3663_v14 }
 0x17c   : > { %3468 = vmatmul.mubr.msk.f32.vlgmr.msra.gmra.mrb[12].mxu1 %vm392_vm0, %v1474_v35  ;;  %3475 = vmatmul.mubr.msk.f32.vlgmr.msra.gmra.mrb[14].mxu0 %vm392_vm0, %v1554_v36 }
 0x17d   : > { %3557 = vmatpush3.bf16.msra.mxu1 %v3789_v13  ;;  %3560 = vmatpush3.bf16.msra.mxu0 %v3789_v13 }
 0x17e   : > { %3488 = vmatprep.mubr.msk.f32.mxu0 %vm3664_vm1, %v3661_v0  ;;  %3481 = vmatprep.mubr.msk.f32.mxu1 %vm3664_vm1, %v3661_v0 }
 0x17f   : > { %v1714_v38 = vpop.permute.xlu1 %1713 }
 0x180   : > { %3482 = vmatmul.mubr.msk.f32.vlgmr.msra.gmra.mrb[14].mxu1 %vm392_vm0, %v1634_v37  ;;  %3489 = vmatmul.mubr.msk.f32.vlgmr.msra.gmra.mrb[16].mxu0 %vm392_vm0, %v1714_v38  ;;  %vm985_vm0 = vcmask 1044400  }
 0x181   : > { %2448 = vmatprep.mubr.f32.mxu1 %v3661_v0  ;;  %2519 = vmatprep.mubr.f32.mxu0 %v3661_v0 }
 0x1c5   : > { %v564_v39 = vpop.f32.mrb[0].mxu1 }
 0x1c6   : > { %v3385_v40 = vpop.f32.mrb[1].mxu1  ;;  %569 = vrot.lane.b32.xlu1 %v564_v39, %s3672_s23  ;;  %s3689_s23 = smov 92  }
 0x237   : > { %v644_v41 = vpop.f32.mrb[2].mxu0 }
 0x238   : > { %v570_v42 = vpop.permute.xlu1 %569  ;;  %v3392_v43 = vpop.f32.mrb[3].mxu0  ;;  %649 = vrot.lane.b32.xlu0 %v644_v41, %s3673_s24  ;;  %s3690_s24 = smov 94  }
 0x239   : > { %573 = vst.msk [vmem:[#allocation2] sm:$0xf] %vm572_vm2, %v570_v42  ;;  %vm986_vm2 = vcmask 195588  }
 0x23a   : > { %vm987_vm5 = vmor %vm986_vm2, %vm985_vm0  ;;  %vm1551_vm0 = vcmask 945808   ;;  %vm1791_vm2 = vcmask 519408  }
 0x23b   : > { %v729_v44 = vpop.f32.mrb[2].mxu1  ;;  %v809_v45 = vpop.f32.mrb[4].mxu0 }
 0x23c   : > { %v3399_v46 = vpop.f32.mrb[3].mxu1  ;;  %v3406_v47 = vpop.f32.mrb[5].mxu0  ;;  %814 = vrot.lane.b32.xlu0 %v809_v45, %s3674_s25  ;;  %734 = vrot.lane.b32.xlu1 %v729_v44, %s3675_s26  ;;  %s3691_s25 = smov 59   ;;  %s3692_s26 = smov 93  }
 0x23f   : > { %v894_v48 = vpop.f32.mrb[4].mxu1  ;;  %v974_v49 = vpop.f32.mrb[6].mxu0 }
 0x240   : > { %v3413_v50 = vpop.f32.mrb[5].mxu1  ;;  %v3420_v51 = vpop.f32.mrb[7].mxu0  ;;  %979 = vrot.lane.b32.xlu0 %v974_v49, %s3676_s27  ;;  %899 = vrot.lane.b32.xlu1 %v894_v48, %s3677_s28  ;;  %s3693_s27 = smov 60  }
 0x243   : > { %v1059_v52 = vpop.f32.mrb[6].mxu1  ;;  %v1139_v53 = vpop.f32.mrb[8].mxu0 }
 0x244   : > { %v3427_v54 = vpop.f32.mrb[7].mxu1  ;;  %v3434_v55 = vpop.f32.mrb[9].mxu0  ;;  %1144 = vrot.lane.b32.xlu0 %v1139_v53, %s3678_s29  ;;  %1064 = vrot.lane.b32.xlu1 %v1059_v52, %s3679_s30 }
 0x247   : > { %v1223_v56 = vpop.f32.mrb[8].mxu1  ;;  %v1303_v57 = vpop.f32.mrb[10].mxu0 }
 0x248   : > { %1308 = vrot.lane.b32.xlu0 %v1303_v57, %s3680_s12  ;;  %v3448_v58 = vpop.f32.mrb[11].mxu0  ;;  %1228 = vrot.lane.b32.xlu1 %v1223_v56, %s3681_s13  ;;  %v3441_v59 = vpop.f32.mrb[9].mxu1 }
 0x24b   : > { %v1383_v60 = vpop.f32.mrb[10].mxu1  ;;  %v1463_v61 = vpop.f32.mrb[12].mxu0 }
 0x24c   : > { %v3462_v62 = vpop.f32.mrb[13].mxu0  ;;  %1468 = vrot.lane.b32.xlu1 %v1463_v61, %s3682_s14  ;;  %1388 = vrot.lane.b32.xlu0 %v1383_v60, %s3683_s15  ;;  %v3455_v63 = vpop.f32.mrb[11].mxu1 }
 0x24f   : > { %v1543_v1 = vpop.f32.mrb[12].mxu1  ;;  %v1623_v2 = vpop.f32.mrb[14].mxu0 }
 0x250   : > { %v3476_v3 = vpop.f32.mrb[15].mxu0  ;;  %1628 = vrot.lane.b32.xlu0 %v1623_v2, %s3684_s16  ;;  %1548 = vrot.lane.b32.xlu1 %v1543_v1, %s3685_s19  ;;  %v3469_v4 = vpop.f32.mrb[13].mxu1 }
 0x253   : > { %v1703_v5 = vpop.f32.mrb[14].mxu1  ;;  %v1783_v6 = vpop.f32.mrb[16].mxu0 }
 0x254   : > { %v3490_v7 = vpop.f32.mrb[17].mxu0  ;;  %1788 = vrot.lane.b32.xlu1 %v1783_v6, %s3686_s20  ;;  %1708 = vrot.lane.b32.xlu0 %v1703_v5, %s3687_s21  ;;  %v3483_v8 = vpop.f32.mrb[15].mxu1 }
 0x2aa   : > { %v650_v9 = vpop.permute.xlu0 %649 }
 0x2ab   : > { %v651_v10 = vrot.slane %v650_v9, 4 }
 0x2ad   : > { %v653_v11 = vsel %vm652_vm8, %v651_v10, %v650_v9  ;;  %vm1151_vm8 = vcmask 261124  }
 0x2ae   : > { %658 = vst.msk [vmem:[#allocation2] sm:$0xff] %vm657_vm9, %v653_v11  ;;  %v815_v12 = vpop.permute.xlu0 %814  ;;  %v735_v13 = vpop.permute.xlu1 %734  ;;  %vm1147_vm9 = vcmask 1031168  }
 0x2af   : > { %v816_v15 = vrot.slane %v815_v12, 4  ;;  %738 = vst.msk [vmem:[#allocation2 + $0x4] sm:$0xf] %vm737_vm10, %v735_v13  ;;  %vm1152_vm10 = vmor %vm1151_vm8, %vm1150_vm7  ;;  %vm1972_vm7 = vcmask 769024   ;;  %vm2091_vm8 = vcmask 752640  }
 0x2b1   : > { %v818_v16 = vsel %vm817_vm13, %v816_v15, %v815_v12  ;;  %vm1471_vm13 = vcmask 388208  }
 0x2b2   : > { %823 = vst.msk [vmem:[#allocation2 + $0x4] sm:$0xff] %vm822_vm14, %v818_v16  ;;  %v980_v17 = vpop.permute.xlu0 %979  ;;  %v900_v18 = vpop.permute.xlu1 %899  ;;  %vm1391_vm14 = vcmask 880208  }
 0x2b3   : > { %v981_v19 = vrot.slane %v980_v17, 4  ;;  %903 = vst.msk [vmem:[#allocation2 + $0x8] sm:$0xf] %vm902_vm15, %v900_v18  ;;  %vm1631_vm15 = vcmask 453808  }
 0x2b5   : > { %v983_v20 = vsel %vm982_vm4, %v981_v19, %v980_v17  ;;  %vm1711_vm4 = vcmask 1011408  }
 0x2b6   : > { %988 = vst.msk [vmem:[#allocation2 + $0x8] sm:$0xff] %vm987_vm5, %v983_v20  ;;  %v1145_v21 = vpop.permute.xlu0 %1144  ;;  %v1065_v22 = vpop.permute.xlu1 %1064  ;;  %vm1818_vm5 = vcmask 519168   ;;  %v2753_v20 = vld [vmem:[%s4204_s7] sm:$0xf] }
 0x2b7   : > { %v1146_v23 = vrot.slane %v1145_v21, 4  ;;  %1068 = vst.msk [vmem:[#allocation2 + $0xc] sm:$0xf] %vm1067_vm6, %v1065_v22  ;;  %vm1853_vm6 = vcmask 1039360  }
 0x2b9   : > { %v1793_v24 = vld [vmem:[#allocation2] sm:$0xff]  ;;  %v1148_v25 = vsel %vm1147_vm9, %v1146_v23, %v1145_v21 }
 0x2ba   : > { %1810 = vst [vmem:[#allocation3] sm:$0xf] %v1793_v24  ;;  %v1309_v26 = vpop.permute.xlu0 %1308  ;;  %1153 = vst.msk [vmem:[#allocation2 + $0xc] sm:$0xff] %vm1152_vm10, %v1148_v25  ;;  %v1229_v27 = vpop.permute.xlu1 %1228  ;;  %v1891_v28 = vcombine.high %v1793_v24, %v1793_v24  ;;  %1895 = vrot.lane.b32.xlu1 %v1793_v24, %s3678_s29  ;;  %1837 = vrot.lane.b32.xlu0 %v1793_v24, %s3688_s22  ;;  %v1830_v35 = vcombine.low %v1793_v24, %v1793_v24  ;;  %vm2031_vm10 = vcmask 760832   ;;  %v2738_v25 = vld [vmem:[%s4203_s6] sm:$0xf] }
 0x2bb   : > { %1312 = vst.msk [vmem:[#allocation2 + $0x14] sm:$0xf] %vm1311_vm11, %v1309_v26  ;;  %vm2216_vm11 = vcmask 482304   ;;  %v3178_v26 = vld [vmem:[%s4207_s10] sm:$0xff] }
 0x2bc   : > { %1232 = vst.msk [vmem:[#allocation2 + $0x10] sm:$0xf] %vm1231_vm12, %v1229_v27  ;;  %1811 = vst [vmem:[#allocation3 + $0x8] sm:$0xf] %v1891_v28  ;;  %vm2153_vm12 = vcmask 490496  }
 0x2be   : > { %v1469_v29 = vpop.permute.xlu1 %1468  ;;  %v1389_v30 = vpop.permute.xlu0 %1388  ;;  %2075 = vrot.lane.b32.xlu1 %v1793_v24, %s3689_s23  ;;  %1956 = vrot.lane.b32.xlu0 %v1793_v24, %s3690_s24 }
 0x2bf   : > { %1472 = vst.msk [vmem:[#allocation2 + $0x18] sm:$0xf] %vm1471_vm13, %v1469_v29  ;;  %vm2279_vm13 = vcmask 474112  }
 0x2c0   : > { %1392 = vst.msk [vmem:[#allocation2 + $0x14] sm:$0xf] %vm1391_vm14, %v1389_v30  ;;  %v3163_v30 = vld [vmem:[%s4206_s9] sm:$0xff]  ;;  %vm2353_vm14 = vcmask 293888  }
 0x2c1   : > { %v2000_v31 = vld [vmem:[#allocation2 + $0x8] sm:$0xff] }
 0x2c2   : > { %v1629_v32 = vpop.permute.xlu0 %1628  ;;  %2198 = vrot.lane.b32.xlu1 %v1793_v24, %s3691_s25  ;;  %v1549_v33 = vpop.permute.xlu1 %1548  ;;  %1897 = vrot.lane.b32.xlu0 %v1891_v28, %s3678_s29  ;;  %v2010_v34 = vcombine.high %v2000_v31, %v2000_v31  ;;  %1812 = vst [vmem:[#allocation3 + $0x10] sm:$0xf] %v2000_v31  ;;  %v1831_v43 = vcombine.low %v2000_v31, %v2000_v31 }
 0x2c3   : > { %1632 = vst.msk [vmem:[#allocation2 + $0x1c] sm:$0xf] %vm1631_vm15, %v1629_v32  ;;  %vm1879_vm15 = vcmask 523268  }
 0x2c4   : > { %1552 = vst.msk [vmem:[#allocation2 + $0x18] sm:$0xf] %vm1551_vm0, %v1549_v33  ;;  %1813 = vst [vmem:[#allocation3 + $0x18] sm:$0xf] %v2010_v34 }
 0x2c6   : > { %2013 = vrot.lane.b32.xlu1 %v1793_v24, %s3692_s26  ;;  %v1789_v37 = vpop.permute.xlu1 %1788  ;;  %1835 = vrot.lane.b32.xlu0 %v1830_v35, %s3688_s22  ;;  %v1709_v38 = vpop.permute.xlu0 %1708 }
 0x2c7   : > { %v1795_v36 = vld [vmem:[#allocation2 + $0x10] sm:$0xff]  ;;  %1792 = vst.msk [vmem:[#allocation2 + $0x20] sm:$0xf] %vm1791_vm2, %v1789_v37 }
 0x2c8   : > { %v1804_v39 = vcombine.high %v1795_v36, %v1795_v36  ;;  %1814 = vst [vmem:[#allocation3 + $0x20] sm:$0xf] %v1795_v36  ;;  %1712 = vst.msk [vmem:[#allocation2 + $0x1c] sm:$0xf] %vm1711_vm4, %v1709_v38  ;;  %v2070_v44 = vcombine.low %v1795_v36, %v1795_v36 }
 0x2ca   : > { %1815 = vst [vmem:[#allocation3 + $0x28] sm:$0xf] %v1804_v39  ;;  %2133 = vrot.lane.b32.xlu1 %v1793_v24, %s3693_s27  ;;  %1954 = vrot.lane.b32.xlu0 %v1830_v35, %s3690_s24 }
 0x2ce   : > { %2259 = vrot.lane.b32.xlu1 %v1793_v24, %s3679_s30  ;;  %2073 = vrot.lane.b32.xlu0 %v1830_v35, %s3689_s23  ;;  %v1797_v42 = vld [vmem:[#allocation2 + $0x20] sm:$0xf] }
 0x2cf   : > { %v1796_v40 = vld [vmem:[#allocation2 + $0x18] sm:$0xff]  ;;  %1819 = vst.msk [vmem:[#allocation3 + $0x40] sm:$0xf] %vm1818_vm5, %v1797_v42  ;;  %v1885_v46 = vld [vmem:[#allocation2 + $0x20] sm:$0xf] }
 0x2d0   : > { %v3890_v41 = vcombine.high %v1796_v40, %v1796_v40  ;;  %1816 = vst [vmem:[#allocation3 + $0x30] sm:$0xf] %v1796_v40  ;;  %v2071_v45 = vcombine.low %v1796_v40, %v1796_v40  ;;  %v2003_v49 = vld [vmem:[#allocation2 + $0x20] sm:$0xf] }
 0x2d1   : > { %v2122_v52 = vld [vmem:[#allocation2 + $0x20] sm:$0xff] }
 0x2d2   : > { %1817 = vst [vmem:[#allocation3 + $0x38] sm:$0xf] %v3890_v41  ;;  %2015 = vrot.lane.b32.xlu1 %v1891_v28, %s3692_s26  ;;  %2196 = vrot.lane.b32.xlu0 %v1830_v35, %s3691_s25  ;;  %v3649_v55 = vld [vmem:[#allocation2 + $0x20] ss:$0 sps:$4 sm:$0xff]   ;;  %v2195_v4 = vcombine.low %v2122_v52, %v2122_v52  ;;  %v2132_v6 = vcombine.high %v2122_v52, %v2122_v52 }
 0x2d3   : > { %v3650_v59 = vld [vmem:[#allocation2 + $0x20] ss:$0 sps:$4 sm:$0xff]  }
 0x2d4   : > { %v3651_v63 = vld [vmem:[#allocation2 + $0x20] ss:$0 sps:$4 sm:$0xff]  }
 0x2d6   : > { %2135 = vrot.lane.b32.xlu1 %v1891_v28, %s3693_s27  ;;  %2017 = vrot.lane.b32.xlu0 %v2000_v31, %s3692_s26 }
 0x2da   : > { %2261 = vrot.lane.b32.xlu1 %v1891_v28, %s3679_s30  ;;  %2137 = vrot.lane.b32.xlu0 %v2000_v31, %s3693_s27 }
 0x2de   : > { %1899 = vrot.lane.b32.xlu1 %v2000_v31, %s3678_s29  ;;  %2263 = vrot.lane.b32.xlu0 %v2000_v31, %s3679_s30 }
 0x2e2   : > { %1841 = vrot.lane.b32.xlu1 %v2000_v31, %s3688_s22  ;;  %2077 = vrot.lane.b32.xlu0 %v1831_v43, %s3689_s23 }
 0x2e6   : > { %1960 = vrot.lane.b32.xlu1 %v2000_v31, %s3690_s24  ;;  %2200 = vrot.lane.b32.xlu0 %v1831_v43, %s3691_s25 }
 0x2ea   : > { %2079 = vrot.lane.b32.xlu1 %v2000_v31, %s3689_s23  ;;  %1903 = vrot.lane.b32.xlu0 %v1795_v36, %s3678_s29 }
 0x2ee   : > { %2202 = vrot.lane.b32.xlu1 %v2000_v31, %s3691_s25  ;;  %2021 = vrot.lane.b32.xlu0 %v1795_v36, %s3692_s26 }
 0x2f2   : > { %1839 = vrot.lane.b32.xlu1 %v1831_v43, %s3688_s22  ;;  %2141 = vrot.lane.b32.xlu0 %v1795_v36, %s3693_s27 }
 0x2f6   : > { %1958 = vrot.lane.b32.xlu1 %v1831_v43, %s3690_s24  ;;  %2083 = vrot.lane.b32.xlu0 %v1795_v36, %s3689_s23 }
 0x2fa   : > { %1901 = vrot.lane.b32.xlu1 %v2010_v34, %s3678_s29  ;;  %2206 = vrot.lane.b32.xlu0 %v1795_v36, %s3691_s25 }
 0x2fe   : > { %1845 = vrot.lane.b32.xlu1 %v1795_v36, %s3688_s22  ;;  %2265 = vrot.lane.b32.xlu0 %v2010_v34, %s3679_s30 }
 0x302   : > { %1964 = vrot.lane.b32.xlu1 %v1795_v36, %s3690_s24  ;;  %1843 = vrot.lane.b32.xlu0 %v2070_v44, %s3688_s22 }
 0x306   : > { %2019 = vrot.lane.b32.xlu1 %v2010_v34, %s3692_s26  ;;  %1962 = vrot.lane.b32.xlu0 %v2070_v44, %s3690_s24 }
 0x30a   : > { %2139 = vrot.lane.b32.xlu1 %v2010_v34, %s3693_s27  ;;  %2081 = vrot.lane.b32.xlu0 %v2070_v44, %s3689_s23 }
 0x30e   : > { %2267 = vrot.lane.b32.xlu1 %v1795_v36, %s3679_s30  ;;  %2204 = vrot.lane.b32.xlu0 %v2070_v44, %s3691_s25 }
 0x312   : > { %1905 = vrot.lane.b32.xlu1 %v1804_v39, %s3678_s29  ;;  %2023 = vrot.lane.b32.xlu0 %v1804_v39, %s3692_s26 }
 0x316   : > { %2143 = vrot.lane.b32.xlu0 %v1804_v39, %s3693_s27  ;;  %2025 = vrot.lane.b32.xlu1 %v1796_v40, %s3692_s26 }
 0x31a   : > { %2269 = vrot.lane.b32.xlu0 %v1804_v39, %s3679_s30  ;;  %2145 = vrot.lane.b32.xlu1 %v1796_v40, %s3693_s27 }
 0x31e   : > { %2271 = vrot.lane.b32.xlu1 %v1796_v40, %s3679_s30  ;;  %1907 = vrot.lane.b32.xlu0 %v1796_v40, %s3678_s29 }
 0x322   : > { %2085 = vrot.lane.b32.xlu1 %v2071_v45, %s3689_s23  ;;  %1849 = vrot.lane.b32.xlu0 %v1796_v40, %s3688_s22 }
 0x326   : > { %2208 = vrot.lane.b32.xlu1 %v2071_v45, %s3691_s25  ;;  %1968 = vrot.lane.b32.xlu0 %v1796_v40, %s3690_s24 }
 0x32a   : > { %1911 = vrot.lane.b32.xlu1 %v1885_v46, %s3678_s29  ;;  %2087 = vrot.lane.b32.xlu0 %v1796_v40, %s3689_s23 }
 0x32c   : > { %v1896_v47 = vpop.permute.xlu1 %1895  ;;  %v3940_v48 = vpop.permute.xlu0 %1837 }
 0x32e   : > { %2029 = vrot.lane.b32.xlu1 %v2003_v49, %s3692_s26  ;;  %2210 = vrot.lane.b32.xlu0 %v1796_v40, %s3691_s25 }
 0x330   : > { %v3944_v50 = vpop.permute.xlu1 %2075  ;;  %v3946_v51 = vpop.permute.xlu0 %1956 }
 0x332   : > { %2149 = vrot.lane.b32.xlu1 %v2122_v52, %s3693_s27  ;;  %1847 = vrot.lane.b32.xlu0 %v2071_v45, %s3688_s22 }
 0x334   : > { %v3950_v53 = vpop.permute.xlu1 %2198  ;;  %v1898_v54 = vpop.permute.xlu0 %1897 }
 0x335   : > { %v1913_v56 = vsel %vm1147_vm9, %v1896_v47, %v1898_v54 }
 0x336   : > { %1930 = vst [vmem:[#allocation3 + $0x48] sm:$0xf] %v1913_v56  ;;  %1851 = vrot.lane.b32.xlu1 %v3649_v55, %s3688_s22  ;;  %1966 = vrot.lane.b32.xlu0 %v2071_v45, %s3690_s24 }
 0x338   : > { %v2014_v57 = vpop.permute.xlu1 %2013  ;;  %v1836_v58 = vpop.permute.xlu0 %1835 }
 0x339   : > { %v1854_v60 = vsel %vm1853_vm6, %v1836_v58, %v3940_v48 }
 0x33a   : > { %1871 = vst [vmem:[#allocation3] sm:$0xf0] %v1854_v60  ;;  %1970 = vrot.lane.b32.xlu1 %v3650_v59, %s3690_s24  ;;  %1909 = vrot.lane.b32.xlu0 %v3890_v41, %s3678_s29 }
 0x33c   : > { %v2134_v61 = vpop.permute.xlu1 %2133  ;;  %v1955_v62 = vpop.permute.xlu0 %1954 }
 0x33d   : > { %v1973_v1 = vsel %vm1972_vm7, %v1955_v62, %v3946_v51 }
 0x33e   : > { %1990 = vst [vmem:[#allocation3 + $0x48] sm:$0xf0] %v1973_v1  ;;  %2089 = vrot.lane.b32.xlu1 %v3651_v63, %s3689_s23  ;;  %2027 = vrot.lane.b32.xlu0 %v3890_v41, %s3692_s26  ;;  %s3599_s23 = smul.u32 72, %s4210_s18 }
 0x340   : > { %v2260_v2 = vpop.permute.xlu1 %2259  ;;  %v2074_v3 = vpop.permute.xlu0 %2073  ;;  %s4183_s26 = scalar_lea.vmem %s4208_s11, %s3599_s23 }
 0x341   : > { %v2092_v5 = vsel %vm2091_vm8, %v2074_v3, %v3944_v50  ;;  %v2308_v60 = vld [vmem:[#allocation3] sm:$0xff] }
 0x342   : > { %2109 = vst [vmem:[#allocation3 + $0x90] sm:$0xf0] %v2092_v5  ;;  %2212 = vrot.lane.b32.xlu1 %v2195_v4, %s3691_s25  ;;  %2147 = vrot.lane.b32.xlu0 %v3890_v41, %s3693_s27 }
 0x344   : > { %v2016_v7 = vpop.permute.xlu1 %2015  ;;  %v2197_v8 = vpop.permute.xlu0 %2196 }
 0x345   : > { %v2032_v9 = vsel %vm2031_vm10, %v2014_v57, %v2016_v7  ;;  %v2217_v10 = vsel %vm2216_vm11, %v2197_v8, %v3950_v53  ;;  %v2317_v55 = vld [vmem:[#allocation3 + $0x48] sm:$0xff] }
 0x346   : > { %2049 = vst [vmem:[#allocation3 + $0x90] sm:$0xf] %v2032_v9  ;;  %2235 = vst [vmem:[#allocation3 + $0xd8] sm:$0xf0] %v2217_v10  ;;  %2214 = vrot.lane.b32.xlu1 %v2122_v52, %s3691_s25  ;;  %2151 = vrot.lane.b32.xlu0 %v2132_v6, %s3693_s27 }
 0x348   : > { %v2136_v11 = vpop.permute.xlu1 %2135  ;;  %v3975_v12 = vpop.permute.xlu0 %2017 }
 0x349   : > { %v2154_v13 = vsel %vm2153_vm12, %v2134_v61, %v2136_v11  ;;  %v2033_v15 = vsel %vm2031_vm10, %v2016_v7, %v3975_v12  ;;  %v3563_v61 = vpack.c.bf16 %v2317_v55, %v2308_v60 }
 0x34a   : > { %2172 = vst [vmem:[#allocation3 + $0xd8] sm:$0xf] %v2154_v13  ;;  %2050 = vst [vmem:[#allocation3 + $0x98] sm:$0xf] %v2033_v15  ;;  %2275 = vrot.lane.b32.xlu1 %v2122_v52, %s3679_s30  ;;  %2273 = vrot.lane.b32.xlu0 %v3890_v41, %s3679_s30 }
 0x34c   : > { %v2262_v16 = vpop.permute.xlu1 %2261  ;;  %v3983_v17 = vpop.permute.xlu0 %2137 }
 0x34d   : > { %v2280_v18 = vsel %vm2279_vm13, %v2260_v2, %v2262_v16  ;;  %v2155_v19 = vsel %vm2153_vm12, %v2136_v11, %v3983_v17 }
 0x34e   : > { %2298 = vst [vmem:[#allocation3 + $0x120] sm:$0xf] %v2280_v18  ;;  %2173 = vst [vmem:[#allocation3 + $0xe0] sm:$0xf] %v2155_v19  ;;  %2277 = vrot.lane.b32.xlu0 %v2132_v6, %s3679_s30  ;;  %2741 = vperm.xlu1 %3642, %v2738_v25   ;;  %v2326_v6 = vld [vmem:[#allocation3 + $0x90] sm:$0xff] }
 0x350   : > { %v1900_v21 = vpop.permute.xlu1 %1899  ;;  %v2264_v22 = vpop.permute.xlu0 %2263 }
 0x351   : > { %v1914_v23 = vsel %vm1147_vm9, %v1898_v54, %v1900_v21  ;;  %v2281_v24 = vsel %vm2279_vm13, %v2262_v16, %v2264_v22  ;;  %v2335_v3 = vld [vmem:[#allocation3 + $0xd8] sm:$0xff] }
 0x352   : > { %1931 = vst [vmem:[#allocation3 + $0x50] sm:$0xf] %v1914_v23  ;;  %2299 = vst [vmem:[#allocation3 + $0x128] sm:$0xf] %v2281_v24  ;;  %2756 = vperm.xlu0 %3641, %v2753_v20   ;;  %3166 = vperm.xlu1 %3642, %v3163_v30   ;;  %v3567_v7 = vpack.c.bf16 %v2335_v3, %v2326_v6 }
 0x354   : > { %v1842_v27 = vpop.permute.xlu1 %1841  ;;  %v2078_v28 = vpop.permute.xlu0 %2077 }
 0x355   : > { %v2093_v29 = vsel %vm2091_vm8, %v3944_v50, %v2078_v28  ;;  %v2344_v20 = vld [vmem:[#allocation3 + $0x120] sm:$0xf] }
 0x356   : > { %2110 = vst [vmem:[#allocation3 + $0x98] sm:$0xf0] %v2093_v29  ;;  %3181 = vperm.xlu0 %3641, %v3178_v26  }
 0x358   : > { %v1961_v31 = vpop.permute.xlu1 %1960  ;;  %v2201_v32 = vpop.permute.xlu0 %2200 }
 0x359   : > { %v2218_v33 = vsel %vm2216_vm11, %v3950_v53, %v2201_v32  ;;  %v2345_v16 = vld [vmem:[#allocation3 + $0x128] sm:$0xf] }
 0x35a   : > { %2236 = vst [vmem:[#allocation3 + $0xe0] sm:$0xf0] %v2218_v33 }
 0x35c   : > { %v4007_v34 = vpop.permute.xlu1 %2079  ;;  %v4009_v35 = vpop.permute.xlu0 %1903 }
 0x35d   : > { %v2094_v36 = vsel %vm2091_vm8, %v2078_v28, %v4007_v34  ;;  %v2327_v62 = vld [vmem:[#allocation3 + $0x98] sm:$0xff] }
 0x35e   : > { %2111 = vst [vmem:[#allocation3 + $0xa0] sm:$0xf0] %v2094_v36 }
 0x360   : > { %v4013_v37 = vpop.permute.xlu1 %2202  ;;  %v4015_v38 = vpop.permute.xlu0 %2021 }
 0x361   : > { %v2219_v39 = vsel %vm2216_vm11, %v2201_v32, %v4013_v37  ;;  %v2336_v58 = vld [vmem:[#allocation3 + $0xe0] sm:$0xff] }
 0x362   : > { %2237 = vst [vmem:[#allocation3 + $0xe8] sm:$0xf0] %v2219_v39  ;;  %v3565_v2 = vpack.c.bf16 %v2336_v58, %v2327_v62 }
 0x364   : > { %v1840_v40 = vpop.permute.xlu1 %1839  ;;  %v4019_v41 = vpop.permute.xlu0 %2141 }
 0x365   : > { %v1855_v42 = vsel %vm1853_vm6, %v3940_v48, %v1840_v40  ;;  %v1856_v43 = vsel %vm1853_vm6, %v1840_v40, %v1842_v27 }
 0x366   : > { %1872 = vst [vmem:[#allocation3 + $0x8] sm:$0xf0] %v1855_v42  ;;  %1873 = vst [vmem:[#allocation3 + $0x10] sm:$0xf0] %v1856_v43 }
 0x368   : > { %v1959_v44 = vpop.permute.xlu1 %1958  ;;  %v4024_v45 = vpop.permute.xlu0 %2083 }
 0x369   : > { %v1974_v46 = vsel %vm1972_vm7, %v3946_v51, %v1959_v44  ;;  %v1975_v47 = vsel %vm1972_vm7, %v1959_v44, %v1961_v31 }
 0x36a   : > { %1991 = vst [vmem:[#allocation3 + $0x50] sm:$0xf0] %v1974_v46  ;;  %1992 = vst [vmem:[#allocation3 + $0x58] sm:$0xf0] %v1975_v47 }
 0x36c   : > { %v1902_v49 = vpop.permute.xlu1 %1901  ;;  %v4029_v50 = vpop.permute.xlu0 %2206 }
 0x36d   : > { %v1915_v52 = vsel %vm1147_vm9, %v1900_v21, %v1902_v49  ;;  %v1916_v48 = vsel %vm1147_vm9, %v1902_v49, %v4009_v35  ;;  %v2309_v56 = vld [vmem:[#allocation3 + $0x8] sm:$0xff]  ;;  %v2310_v33 = vld [vmem:[#allocation3 + $0x10] sm:$0xff] }
 0x36e   : > { %1932 = vst [vmem:[#allocation3 + $0x58] sm:$0xf] %v1915_v52  ;;  %1933 = vst [vmem:[#allocation3 + $0x60] sm:$0xf] %v1916_v48 }
 0x370   : > { %v4034_v53 = vpop.permute.xlu1 %1845  ;;  %v2266_v54 = vpop.permute.xlu0 %2265 }
 0x371   : > { %v2282_v51 = vsel %vm2279_vm13, %v2264_v22, %v2266_v54  ;;  %v2318_v57 = vld [vmem:[#allocation3 + $0x50] sm:$0xff] }
 0x372   : > { %2300 = vst [vmem:[#allocation3 + $0x130] sm:$0xf] %v2282_v51  ;;  %v3561_v59 = vpack.c.bf16 %v2318_v57, %v2309_v56 }
 0x374   : > { %v4037_v63 = vpop.permute.xlu1 %1964  ;;  %3562 = vmatprep.subr.bf16.mxu1 %v3561_v59  ;;  %v1844_v1 = vpop.permute.xlu0 %1843 }
 0x375   : > { %v1857_v4 = vsel %vm1853_vm6, %v1842_v27, %v1844_v1  ;;  %v1858_v5 = vsel %vm1853_vm6, %v1844_v1, %v4034_v53  ;;  %3564 = vmatpush1.bf16.msra.mxu1 %v3563_v61  ;;  %v2319_v26 = vld [vmem:[#allocation3 + $0x58] sm:$0xff] }
 0x376   : > { %1874 = vst [vmem:[#allocation3 + $0x18] sm:$0xf0] %v1857_v4  ;;  %1875 = vst [vmem:[#allocation3 + $0x20] sm:$0xf0] %v1858_v5  ;;  %3566 = vmatprep.subr.bf16.mxu1 %v3565_v2 }
 0x378   : > { %v2020_v8 = vpop.permute.xlu1 %2019  ;;  %v1963_v9 = vpop.permute.xlu0 %1962 }
 0x379   : > { %v2034_v10 = vsel %vm2031_vm10, %v3975_v12, %v2020_v8  ;;  %v2035_v11 = vsel %vm2031_vm10, %v2020_v8, %v4015_v38  ;;  %v1976_v13 = vsel %vm1972_vm7, %v1961_v31, %v1963_v9  ;;  %v1977_v15 = vsel %vm1972_vm7, %v1963_v9, %v4037_v63  ;;  %3568 = vmatpush1.bf16.msra.mxu1 %v3567_v7  ;;  %v4053_v12 = vld [vmem:[%s4202_s5] sm:$0xf]  ;;  %v2346_v59 = vld [vmem:[#allocation3 + $0x130] sm:$0xf] }
 0x37a   : > { %2051 = vst [vmem:[#allocation3 + $0xa0] sm:$0xf] %v2034_v10  ;;  %2052 = vst [vmem:[#allocation3 + $0xa8] sm:$0xf] %v2035_v11  ;;  %3292 = vmatprep.subr.msk.mxu1 %vm489_vm3, %v2345_v16 }
 0x37b   : > { %1993 = vst [vmem:[#allocation3 + $0x60] sm:$0xf0] %v1976_v13  ;;  %1994 = vst [vmem:[#allocation3 + $0x68] sm:$0xf0] %v1977_v15 }
 0x37c   : > { %v2140_v18 = vpop.permute.xlu1 %2139  ;;  %v2082_v19 = vpop.permute.xlu0 %2081 }
 0x37d   : > { %v2156_v21 = vsel %vm2153_vm12, %v3983_v17, %v2140_v18  ;;  %v2157_v22 = vsel %vm2153_vm12, %v2140_v18, %v4019_v41  ;;  %v2095_v23 = vsel %vm2091_vm8, %v4007_v34, %v2082_v19  ;;  %v2096_v24 = vsel %vm2091_vm8, %v2082_v19, %v4024_v45  ;;  %3293 = vmatpush1.msk.msra.mxu1 %vm489_vm3, %v2344_v20  ;;  %v2311_v30 = vld [vmem:[#allocation3 + $0x18] sm:$0xff] }
 0x37e   : > { %2174 = vst [vmem:[#allocation3 + $0xe8] sm:$0xf] %v2156_v21  ;;  %2175 = vst [vmem:[#allocation3 + $0xf0] sm:$0xf] %v2157_v22  ;;  %3294 = vmatmul.mubr.msk.f32.vlgmr.msra.gmra.mrb[16].mxu1 %vm2353_vm14, %v4053_v12  ;;  %v3571_v34 = vpack.c.bf16 %v2319_v26, %v2310_v33 }
 0x37f   : > { %2112 = vst [vmem:[#allocation3 + $0xa8] sm:$0xf0] %v2095_v23  ;;  %2113 = vst [vmem:[#allocation3 + $0xb0] sm:$0xf0] %v2096_v24  ;;  %2590 = vmatprep.mubr.f32.mxu1 %v3661_v0 }
 0x380   : > { %v2268_v17 = vpop.permute.xlu1 %2267  ;;  %v2205_v25 = vpop.permute.xlu0 %2204 }
 0x381   : > { %v2283_v27 = vsel %vm2279_vm13, %v2266_v54, %v2268_v17  ;;  %v2220_v28 = vsel %vm2216_vm11, %v4013_v37, %v2205_v25  ;;  %v2221_v29 = vsel %vm2216_vm11, %v2205_v25, %v4029_v50  ;;  %v2328_v48 = vld [vmem:[#allocation3 + $0xa0] sm:$0xff] }
 0x382   : > { %v2320_v31 = vld [vmem:[#allocation3 + $0x60] sm:$0xff]  ;;  %2301 = vst [vmem:[#allocation3 + $0x138] sm:$0xf] %v2283_v27  ;;  %2238 = vst [vmem:[#allocation3 + $0xf0] sm:$0xf0] %v2220_v28 }
 0x383   : > { %2239 = vst [vmem:[#allocation3 + $0xf8] sm:$0xf0] %v2221_v29  ;;  %v3569_v32 = vpack.c.bf16 %v2320_v31, %v2311_v30 }
 0x384   : > { %v1906_v36 = vpop.permute.xlu1 %1905  ;;  %v2024_v39 = vpop.permute.xlu0 %2023 }
 0x385   : > { %3570 = vmatprep.subr.bf16.mxu0 %v3569_v32  ;;  %v1917_v40 = vsel %vm1147_vm9, %v4009_v35, %v1906_v36  ;;  %v2036_v37 = vsel %vm2031_vm10, %v4015_v38, %v2024_v39  ;;  %v2337_v44 = vld [vmem:[#allocation3 + $0xe8] sm:$0xff] }
 0x386   : > { %3572 = vmatpush1.bf16.msra.mxu0 %v3571_v34  ;;  %1934 = vst [vmem:[#allocation3 + $0x68] sm:$0xf] %v1917_v40  ;;  %2053 = vst [vmem:[#allocation3 + $0xb0] sm:$0xf] %v2036_v37  ;;  %v2329_v49 = vld [vmem:[#allocation3 + $0xa8] sm:$0xff]  ;;  %v3575_v38 = vpack.c.bf16 %v2337_v44, %v2328_v48  ;;  %v2312_v34 = vld [vmem:[#allocation3 + $0x20] sm:$0xff] }
 0x388   : > { %v4076_v42 = vpop.permute.xlu1 %2025  ;;  %v2144_v43 = vpop.permute.xlu0 %2143 }
 0x389   : > { %v2037_v46 = vsel %vm2031_vm10, %v2024_v39, %v4076_v42  ;;  %v2158_v47 = vsel %vm2153_vm12, %v4019_v41, %v2144_v43  ;;  %v2338_v52 = vld [vmem:[#allocation3 + $0xf0] sm:$0xff]  ;;  %v2347_v57 = vld [vmem:[#allocation3 + $0x138] sm:$0xf] }
 0x38a   : > { %2054 = vst [vmem:[#allocation3 + $0xb8] sm:$0xf] %v2037_v46  ;;  %2176 = vst [vmem:[#allocation3 + $0xf8] sm:$0xf] %v2158_v47  ;;  %v3573_v35 = vpack.c.bf16 %v2338_v52, %v2329_v49 }
 0x38c   : > { %v4082_v54 = vpop.permute.xlu1 %2145  ;;  %3574 = vmatprep.subr.bf16.mxu0 %v3573_v35  ;;  %v2270_v55 = vpop.permute.xlu0 %2269 }
 0x38d   : > { %v2159_v51 = vsel %vm2153_vm12, %v2144_v43, %v4082_v54  ;;  %v2284_v56 = vsel %vm2279_vm13, %v2268_v17, %v2270_v55  ;;  %3576 = vmatpush1.bf16.msra.mxu0 %v3575_v38  ;;  %v2321_v26 = vld [vmem:[#allocation3 + $0x68] sm:$0xff] }
 0x38e   : > { %2177 = vst [vmem:[#allocation3 + $0x100] sm:$0xf] %v2159_v51  ;;  %2302 = vst [vmem:[#allocation3 + $0x140] sm:$0xf] %v2284_v56  ;;  %3295 = vmatprep.subr.msk.mxu0 %vm489_vm3, %v2347_v57 }
 0x390   : > { %v4088_v41 = vpop.permute.xlu1 %2271  ;;  %v1908_v58 = vpop.permute.xlu0 %1907 }
 0x391   : > { %v2285_v60 = vsel %vm2279_vm13, %v2270_v55, %v4088_v41  ;;  %v1918_v61 = vsel %vm1147_vm9, %v1906_v36, %v1908_v58  ;;  %3296 = vmatpush1.msk.msra.mxu0 %vm489_vm3, %v2346_v59  ;;  %v3579_v36 = vpack.c.bf16 %v2321_v26, %v2312_v34  ;;  %v2339_v44 = vld [vmem:[#allocation3 + $0xf8] sm:$0xff]  ;;  %v2330_v55 = vld [vmem:[#allocation3 + $0xb0] sm:$0xff] }
 0x392   : > { %2303 = vst [vmem:[#allocation3 + $0x148] sm:$0xf] %v2285_v60  ;;  %1935 = vst [vmem:[#allocation3 + $0x70] sm:$0xf] %v1918_v61  ;;  %3297 = vmatmul.mubr.msk.f32.vlgmr.msra.gmra.mrb[18].mxu0 %vm2353_vm14, %v4053_v12  ;;  %v3583_v56 = vpack.c.bf16 %v2339_v44, %v2330_v55 }
 0x393   : > { %2661 = vmatprep.mubr.f32.mxu0 %v3661_v0 }
 0x394   : > { %v2086_v62 = vpop.permute.xlu1 %2085  ;;  %v1850_v1 = vpop.permute.xlu0 %1849 }
 0x395   : > { %v2097_v2 = vsel %vm2091_vm8, %v4024_v45, %v2086_v62 }
 0x396   : > { %2114 = vst [vmem:[#allocation3 + $0xb8] sm:$0xf0] %v2097_v2  ;;  %v2348_v2 = vld [vmem:[#allocation3 + $0x140] sm:$0xf] }
 0x398   : > { %v2209_v3 = vpop.permute.xlu1 %2208  ;;  %v1969_v4 = vpop.permute.xlu0 %1968 }
 0x399   : > { %v2222_v5 = vsel %vm2216_vm11, %v4029_v50, %v2209_v3  ;;  %v2349_v60 = vld [vmem:[#allocation3 + $0x148] sm:$0xf] }
 0x39a   : > { %2240 = vst [vmem:[#allocation3 + $0x100] sm:$0xf0] %v2222_v5 }
 0x39c   : > { %v1912_v6 = vpop.permute.xlu1 %1911  ;;  %v2088_v7 = vpop.permute.xlu0 %2087 }
 0x39d   : > { %1938 = vst.msk [vmem:[#allocation3 + $0x88] sm:$0xf] %vm1818_vm5, %v1912_v6  ;;  %v2098_v8 = vsel %vm2091_vm8, %v2086_v62, %v2088_v7  ;;  %v2331_v39 = vld [vmem:[#allocation3 + $0xb8] sm:$0xff] }
 0x39e   : > { %2115 = vst [vmem:[#allocation3 + $0xc0] sm:$0xf0] %v2098_v8 }
 0x3a0   : > { %v2030_v9 = vpop.permute.xlu1 %2029  ;;  %v2211_v10 = vpop.permute.xlu0 %2210 }
 0x3a1   : > { %2057 = vst.msk [vmem:[#allocation3 + $0xd0] sm:$0xf] %vm1818_vm5, %v2030_v9  ;;  %v2223_v45 = vsel %vm2216_vm11, %v2209_v3, %v2211_v10  ;;  %v2340_v32 = vld [vmem:[#allocation3 + $0x100] sm:$0xff] }
 0x3a2   : > { %2241 = vst [vmem:[#allocation3 + $0x108] sm:$0xf0] %v2223_v45  ;;  %v3581_v43 = vpack.c.bf16 %v2340_v32, %v2331_v39 }
 0x3a4   : > { %v4105_v11 = vpop.permute.xlu1 %2149  ;;  %v1848_v13 = vpop.permute.xlu0 %1847 }
 0x3a5   : > { %v1859_v50 = vsel %vm1853_vm6, %v4034_v53, %v1848_v13  ;;  %v1860_v15 = vsel %vm1853_vm6, %v1848_v13, %v1850_v1 }
 0x3a6   : > { %1876 = vst [vmem:[#allocation3 + $0x28] sm:$0xf0] %v1859_v50  ;;  %1877 = vst [vmem:[#allocation3 + $0x30] sm:$0xf0] %v1860_v15 }
 0x3a8   : > { %v1852_v16 = vpop.permute.xlu1 %1851  ;;  %v1967_v18 = vpop.permute.xlu0 %1966 }
 0x3a9   : > { %v1861_v19 = vsel %vm1853_vm6, %v1850_v1, %v1852_v16  ;;  %1880 = vst.msk [vmem:[#allocation3 + $0x40] sm:$0xf0] %vm1879_vm15, %v1852_v16  ;;  %v1978_v20 = vsel %vm1972_vm7, %v4037_v63, %v1967_v18  ;;  %v1979_v21 = vsel %vm1972_vm7, %v1967_v18, %v1969_v4 }
 0x3aa   : > { %1878 = vst [vmem:[#allocation3 + $0x38] sm:$0xf0] %v1861_v19  ;;  %1995 = vst [vmem:[#allocation3 + $0x70] sm:$0xf0] %v1978_v20 }
 0x3ab   : > { %1996 = vst [vmem:[#allocation3 + $0x78] sm:$0xf0] %v1979_v21 }
 0x3ac   : > { %v1971_v53 = vpop.permute.xlu1 %1970  ;;  %v1910_v22 = vpop.permute.xlu0 %1909 }
 0x3ad   : > { %v1980_v23 = vsel %vm1972_vm7, %v1969_v4, %v1971_v53  ;;  %1998 = vst.msk [vmem:[#allocation3 + $0x88] sm:$0xf0] %vm1879_vm15, %v1971_v53  ;;  %v1919_v24 = vsel %vm1147_vm9, %v1908_v58, %v1910_v22  ;;  %v1920_v17 = vsel %vm1147_vm9, %v1910_v22, %v1912_v6  ;;  %v2313_v30 = vld [vmem:[#allocation3 + $0x28] sm:$0xff]  ;;  %v2314_v46 = vld [vmem:[#allocation3 + $0x30] sm:$0xff]  ;;  %vm2778_vm9 = vcmask 31744  }
 0x3ae   : > { %1997 = vst [vmem:[#allocation3 + $0x80] sm:$0xf0] %v1980_v23  ;;  %1936 = vst [vmem:[#allocation3 + $0x78] sm:$0xf] %v1919_v24 }
 0x3af   : > { %1937 = vst [vmem:[#allocation3 + $0x80] sm:$0xf] %v1920_v17 }
 0x3b0   : > { %v2090_v25 = vpop.permute.xlu1 %2089  ;;  %v2028_v63 = vpop.permute.xlu0 %2027  ;;  %v2316_v3 = vld [vmem:[#allocation3 + $0x40] sm:$0xff] }
 0x3b1   : > { %v2099_v27 = vsel %vm2091_vm8, %v2088_v7, %v2090_v25  ;;  %2117 = vst.msk [vmem:[#allocation3 + $0xd0] sm:$0xf0] %vm1879_vm15, %v2090_v25  ;;  %v2038_v28 = vsel %vm2031_vm10, %v4076_v42, %v2028_v63  ;;  %v2039_v29 = vsel %vm2031_vm10, %v2028_v63, %v2030_v9  ;;  %v2322_v31 = vld [vmem:[#allocation3 + $0x70] sm:$0xff]  ;;  %v2315_v52 = vld [vmem:[#allocation3 + $0x38] sm:$0xff] }
 0x3b2   : > { %2116 = vst [vmem:[#allocation3 + $0xc8] sm:$0xf0] %v2099_v27  ;;  %2055 = vst [vmem:[#allocation3 + $0xc0] sm:$0xf] %v2038_v28  ;;  %v3577_v33 = vpack.c.bf16 %v2322_v31, %v2313_v30  ;;  %v2777_v27 = vld [vmem:[%s4205_s8] sm:$0xff] }
 0x3b3   : > { %2056 = vst [vmem:[#allocation3 + $0xc8] sm:$0xf] %v2039_v29 }
 0x3b4   : > { %v2213_v40 = vpop.permute.xlu1 %2212  ;;  %3578 = vmatprep.subr.bf16.mxu1 %v3577_v33  ;;  %v2148_v37 = vpop.permute.xlu0 %2147  ;;  %v2325_v61 = vld [vmem:[#allocation3 + $0x88] sm:$0xff] }
 0x3b5   : > { %v2224_v42 = vsel %vm2216_vm11, %v2211_v10, %v2213_v40  ;;  %v2160_v47 = vsel %vm2153_vm12, %v4082_v54, %v2148_v37  ;;  %v2161_v49 = vsel %vm2153_vm12, %v2148_v37, %v4105_v11  ;;  %3580 = vmatpush1.bf16.msra.mxu1 %v3579_v36  ;;  %v2323_v48 = vld [vmem:[#allocation3 + $0x78] sm:$0xff]  ;;  %v3594_v7 = vpack.c.bf16 %v2325_v61, %v2316_v3 }
 0x3b6   : > { %v2324_v35 = vld [vmem:[#allocation3 + $0x80] sm:$0xff]  ;;  %2242 = vst [vmem:[#allocation3 + $0x110] sm:$0xf0] %v2224_v42  ;;  %2178 = vst [vmem:[#allocation3 + $0x108] sm:$0xf] %v2160_v47  ;;  %3582 = vmatprep.subr.bf16.mxu1 %v3581_v43  ;;  %v3587_v51 = vpack.c.bf16 %v2323_v48, %v2314_v46 }
 0x3b7   : > { %2179 = vst [vmem:[#allocation3 + $0x110] sm:$0xf] %v2161_v49  ;;  %v3585_v38 = vpack.c.bf16 %v2324_v35, %v2315_v52 }
 0x3b8   : > { %v2215_v57 = vpop.permute.xlu1 %2214  ;;  %v2152_v58 = vpop.permute.xlu0 %2151  ;;  %v2334_v50 = vld [vmem:[#allocation3 + $0xd0] sm:$0xff] }
 0x3b9   : > { %3586 = vmatprep.subr.bf16.mxu0 %v3585_v38  ;;  %v2225_v54 = vsel %vm2216_vm11, %v2213_v40, %v2215_v57  ;;  %v2162_v59 = vsel %vm2153_vm12, %v4105_v11, %v2152_v58  ;;  %3584 = vmatpush1.bf16.msra.mxu1 %v3583_v56  ;;  %v2332_v9 = vld [vmem:[#allocation3 + $0xc0] sm:$0xff] }
 0x3ba   : > { %3588 = vmatpush1.bf16.msra.mxu0 %v3587_v51  ;;  %2243 = vst.msk [vmem:[#allocation3 + $0x118] sm:$0xf0] %vm1879_vm15, %v2225_v54  ;;  %3298 = vmatprep.subr.msk.mxu1 %vm489_vm3, %v2349_v60  ;;  %v2333_v4 = vld [vmem:[#allocation3 + $0xc8] sm:$0xff] }
 0x3bb   : > { %2180 = vst.msk [vmem:[#allocation3 + $0x118] sm:$0xf] %vm1818_vm5, %v2162_v59 }
 0x3bc   : > { %v2276_v62 = vpop.permute.xlu1 %2275  ;;  %v2274_v1 = vpop.permute.xlu0 %2273 }
 0x3bd   : > { %v2286_v5 = vsel %vm2279_vm13, %v4088_v41, %v2274_v1  ;;  %v2287_v6 = vsel %vm2279_vm13, %v2274_v1, %v2276_v62  ;;  %3299 = vmatpush1.msk.msra.mxu1 %vm489_vm3, %v2348_v2  ;;  %v2341_v10 = vld [vmem:[#allocation3 + $0x108] sm:$0xff] }
 0x3be   : > { %v2342_v8 = vld [vmem:[#allocation3 + $0x110] sm:$0xff]  ;;  %2304 = vst [vmem:[#allocation3 + $0x150] sm:$0xf] %v2286_v5  ;;  %2305 = vst [vmem:[#allocation3 + $0x158] sm:$0xf] %v2287_v6  ;;  %3300 = vmatmul.mubr.msk.f32.vlgmr.msra.gmra.mrb[18].mxu1 %vm2353_vm14, %v4053_v12  ;;  %3593 = vmatprep.subr.bf16.mxu1 %v3663_v14  ;;  %v3591_v11 = vpack.c.bf16 %v2341_v10, %v2332_v9 }
 0x3bf   : > { %v3589_v45 = vpack.c.bf16 %v2342_v8, %v2333_v4  ;;  %3595 = vmatpush3.bf16.msra.mxu1 %v3594_v7  ;;  %3501 = vmatprep.mubr.msk.f32.mxu1 %vm3664_vm1, %v3661_v0 }
 0x3c0   : > { %v2278_v41 = vpop.permute.xlu0 %2277  ;;  %3596 = vmatprep.subr.bf16.mxu1 %v3663_v14 }
 0x3c1   : > { %3590 = vmatprep.subr.bf16.mxu0 %v3589_v45  ;;  %v2288_v13 = vsel %vm2279_vm13, %v2276_v62, %v2278_v41 }
 0x3c2   : > { %3592 = vmatpush1.bf16.msra.mxu0 %v3591_v11  ;;  %v2343_v15 = vld [vmem:[#allocation3 + $0x118] sm:$0xff]  ;;  %2306 = vst.msk [vmem:[#allocation3 + $0x160] sm:$0xf] %vm1818_vm5, %v2288_v13 }
 0x3c3   : > { %v3597_v16 = vpack.c.bf16 %v2343_v15, %v2334_v50 }
 0x3c5   : > { %3598 = vmatpush3.bf16.msra.mxu1 %v3597_v16  ;;  %v2351_v18 = vld [vmem:[#allocation3 + $0x158] sm:$0xf]  ;;  %v2350_v19 = vld [vmem:[#allocation3 + $0x150] sm:$0xf] }
 0x3c6   : > { %3499 = vmatprep.subr.mxu1 %v3661_v0  ;;  %3301 = vmatprep.subr.msk.mxu0 %vm489_vm3, %v2351_v18 }
 0x3c7   : > { %3302 = vmatpush1.msk.msra.mxu0 %vm489_vm3, %v2350_v19 }
 0x3c8   : > { %3303 = vmatmul.mubr.msk.f32.vlgmr.msra.gmra.mrb[20].mxu0 %vm2353_vm14, %v4053_v12 }
 0x3c9   : > { %v2352_v14 = vld [vmem:[#allocation3 + $0x160] sm:$0xf]  ;;  %2873 = vmatprep.mubr.f32.mxu0 %v3661_v0 }
 0x3ca   : > { %3500 = vmatpush3.msk.msra.mxu1 %vm489_vm3, %v2352_v14 }
 0x3cb   : > { %3502 = vmatmul.mubr.msk.f32.vlgmr.msra.gmra.mrb[20].mxu1 %vm2353_vm14, %v4053_v12 }
 0x3cc   : > { %3015 = vmatprep.mubr.f32.mxu1 %v3661_v0 }
 0x3cd   : > { %v2742_v20 = vpop.permute.xlu1 %2741 }
 0x3d1   : > { %v2757_v23 = vpop.permute.xlu0 %2756 }
 0x3d5   : > { %v3182_v1 = vpop.permute.xlu0 %3181 }
 0x451   : > { %v2450_v21 = vpop.f32.mrb[16].mxu1 }
 0x452   : > { %v2744_v53 = vmul.f32 %v2742_v20, %v2450_v21  ;;  %v2452_v22 = vpop.f32.mrb[17].mxu1 }
 0x453   : > { %v2745_v24 = vmul.f32 %v2742_v20, %v2452_v22 }
 0x454   : > { %v2759_v17 = vadd.f32 %v2757_v23, %v2744_v53 }
 0x455   : > { %v2760_v25 = vadd.f32 %v2757_v23, %v2745_v24 }
 0x456   : > { %v2768_v26 = vmax.f32 %v2759_v17, 0.0 }
 0x457   : > { %v2769_v63 = vmax.f32 %v2760_v25, 0.0 }
 0x459   : > { %3306 = vmatprep.subr.msk.mxu0 %vm489_vm3, %v2769_v63 }
 0x45a   : > { %3307 = vmatpush1.msk.msra.mxu0 %vm489_vm3, %v2768_v26 }
 0x45b   : > { %3308 = vmatmul.mubr.msk.f32.vlgmr.msra.gmra.mrb[22].mxu0 %vm2778_vm9, %v2777_v27 }
 0x45c   : > { %2944 = vmatprep.mubr.f32.mxu0 %v3661_v0 }
 0x465   : > { %v2521_v12 = vpop.f32.mrb[18].mxu0 }
 0x466   : > { %v2746_v28 = vmul.f32 %v2742_v20, %v2521_v12  ;;  %v2523_v29 = vpop.f32.mrb[19].mxu0 }
 0x467   : > { %v2747_v30 = vmul.f32 %v2742_v20, %v2523_v29 }
 0x468   : > { %v2761_v31 = vadd.f32 %v2757_v23, %v2746_v28 }
 0x469   : > { %v2762_v32 = vadd.f32 %v2757_v23, %v2747_v30 }
 0x46a   : > { %v2770_v34 = vmax.f32 %v2761_v31, 0.0 }
 0x46b   : > { %v2771_v33 = vmax.f32 %v2762_v32, 0.0 }
 0x46d   : > { %3309 = vmatprep.subr.msk.mxu0 %vm489_vm3, %v2771_v33 }
 0x46e   : > { %3310 = vmatpush1.msk.msra.mxu0 %vm489_vm3, %v2770_v34 }
 0x46f   : > { %3311 = vmatmul.mubr.msk.f32.vlgmr.msra.gmra.mrb[24].mxu0 %vm2778_vm9, %v2777_v27 }
 0x470   : > { %3086 = vmatprep.mubr.f32.mxu0 %v3661_v0 }
 0x491   : > { %v2592_v36 = vpop.f32.mrb[18].mxu1 }
 0x492   : > { %v2748_v39 = vmul.f32 %v2742_v20, %v2592_v36  ;;  %v2594_v40 = vpop.f32.mrb[19].mxu1 }
 0x493   : > { %v2749_v37 = vmul.f32 %v2742_v20, %v2594_v40 }
 0x494   : > { %v2763_v43 = vadd.f32 %v2757_v23, %v2748_v39 }
 0x495   : > { %v2764_v44 = vadd.f32 %v2757_v23, %v2749_v37 }
 0x496   : > { %v2772_v42 = vmax.f32 %v2763_v43, 0.0 }
 0x497   : > { %v2773_v46 = vmax.f32 %v2764_v44, 0.0 }
 0x499   : > { %3312 = vmatprep.subr.msk.mxu1 %vm489_vm3, %v2773_v46 }
 0x49a   : > { %3313 = vmatpush1.msk.msra.mxu1 %vm489_vm3, %v2772_v42 }
 0x49b   : > { %v2663_v47 = vpop.f32.mrb[20].mxu0  ;;  %3314 = vmatmul.mubr.msk.f32.vlgmr.msra.gmra.mrb[22].mxu1 %vm2778_vm9, %v2777_v27  ;;  %3504 = vmatprep.subr.mxu1 %v3661_v0 }
 0x49c   : > { %v2750_v49 = vmul.f32 %v2742_v20, %v2663_v47  ;;  %v2665_v52 = vpop.f32.mrb[21].mxu0  ;;  %3506 = vmatprep.mubr.msk.f32.mxu1 %vm3664_vm1, %v3661_v0  ;;  %v3167_v0 = vpop.permute.xlu1 %3166  ;;  %vm3210_vm1 = vcmask 523264  }
 0x49d   : > { %v2751_v35 = vmul.f32 %v2742_v20, %v2665_v52 }
 0x49e   : > { %v2765_v48 = vadd.f32 %v2757_v23, %v2750_v49  ;;  %v2734_v38 = vpop.f32.mrb[20].mxu1 }
 0x49f   : > { %v2766_v55 = vadd.f32 %v2757_v23, %v2751_v35  ;;  %v2752_v51 = vmul.f32 %v2742_v20, %v2734_v38  ;;  %v3503_v56 = vpop.f32.mrb[21].mxu1 }
 0x4a0   : > { %v2774_v54 = vmax.f32 %v2765_v48, 0.0 }
 0x4a1   : > { %v2775_v57 = vmax.f32 %v2766_v55, 0.0  ;;  %v2767_v58 = vadd.f32 %v2757_v23, %v2752_v51 }
 0x4a3   : > { %v2776_v59 = vmax.f32 %v2767_v58, 0.0  ;;  %3315 = vmatprep.subr.msk.mxu0 %vm489_vm3, %v2775_v57 }
 0x4a4   : > { %3316 = vmatpush1.msk.msra.mxu0 %vm489_vm3, %v2774_v54 }
 0x4a5   : > { %3317 = vmatmul.mubr.msk.f32.vlgmr.msra.gmra.mrb[26].mxu0 %vm2778_vm9, %v2777_v27  ;;  %3505 = vmatpush3.msk.msra.mxu1 %vm489_vm3, %v2776_v59 }
 0x4a6   : > { %3507 = vmatmul.mubr.msk.f32.vlgmr.msra.gmra.mrb[24].mxu1 %vm2778_vm9, %v2777_v27 }
 0x52e   : > { %v2875_v60 = vpop.f32.mrb[22].mxu0 }
 0x52f   : > { %v3169_v61 = vmul.f32 %v3167_v0, %v2875_v60  ;;  %v2877_v62 = vpop.f32.mrb[23].mxu0 }
 0x530   : > { %v3170_v2 = vmul.f32 %v3167_v0, %v2877_v62 }
 0x531   : > { %v3184_v3 = vadd.f32 %v3182_v1, %v3169_v61 }
 0x532   : > { %v3185_v4 = vadd.f32 %v3182_v1, %v3170_v2 }
 0x533   : > { %v3193_v5 = vmax.f32 %v3184_v3, 0.0 }
 0x534   : > { %v3194_v6 = vmax.f32 %v3185_v4, 0.0 }
 0x535   : > { %3202 = vst [vmem:[%s4183_s26] sm:$0xff] %v3193_v5 }
 0x536   : > { %3203 = vst [vmem:[%s4183_s26 + $0x8] sm:$0xff] %v3194_v6 }
 0x542   : > { %v2946_v7 = vpop.f32.mrb[24].mxu0 }
 0x543   : > { %v3171_v8 = vmul.f32 %v3167_v0, %v2946_v7  ;;  %v2948_v9 = vpop.f32.mrb[25].mxu0 }
 0x544   : > { %v3172_v10 = vmul.f32 %v3167_v0, %v2948_v9 }
 0x545   : > { %v3186_v45 = vadd.f32 %v3182_v1, %v3171_v8 }
 0x546   : > { %v3187_v11 = vadd.f32 %v3182_v1, %v3172_v10 }
 0x547   : > { %v3195_v41 = vmax.f32 %v3186_v45, 0.0 }
 0x548   : > { %v3196_v13 = vmax.f32 %v3187_v11, 0.0 }
 0x549   : > { %3204 = vst [vmem:[%s4183_s26 + $0x10] sm:$0xff] %v3195_v41 }
 0x54a   : > { %3205 = vst [vmem:[%s4183_s26 + $0x18] sm:$0xff] %v3196_v13 }
 0x56e   : > { %v3017_v50 = vpop.f32.mrb[22].mxu1 }
 0x56f   : > { %v3173_v15 = vmul.f32 %v3167_v0, %v3017_v50  ;;  %v3019_v16 = vpop.f32.mrb[23].mxu1 }
 0x570   : > { %v3174_v18 = vmul.f32 %v3167_v0, %v3019_v16 }
 0x571   : > { %v3188_v19 = vadd.f32 %v3182_v1, %v3173_v15 }
 0x572   : > { %v3189_v14 = vadd.f32 %v3182_v1, %v3174_v18 }
 0x573   : > { %v3197_v20 = vmax.f32 %v3188_v19, 0.0 }
 0x574   : > { %v3198_v21 = vmax.f32 %v3189_v14, 0.0 }
 0x575   : > { %3206 = vst [vmem:[%s4183_s26 + $0x20] sm:$0xff] %v3197_v20 }
 0x576   : > { %3207 = vst [vmem:[%s4183_s26 + $0x28] sm:$0xff] %v3198_v21 }
 0x578   : > { %v3088_v53 = vpop.f32.mrb[26].mxu0 }
 0x579   : > { %v3175_v22 = vmul.f32 %v3167_v0, %v3088_v53  ;;  %v3090_v23 = vpop.f32.mrb[27].mxu0  ;;  %v3159_v24 = vpop.f32.mrb[24].mxu1 }
 0x57a   : > { %v3176_v17 = vmul.f32 %v3167_v0, %v3090_v23  ;;  %v3177_v25 = vmul.f32 %v3167_v0, %v3159_v24  ;;  %v3508_v63 = vpop.f32.mrb[25].mxu1 }
 0x57b   : > { %v3190_v26 = vadd.f32 %v3182_v1, %v3175_v22 }
 0x57c   : > { %v3191_v27 = vadd.f32 %v3182_v1, %v3176_v17  ;;  %v3192_v12 = vadd.f32 %v3182_v1, %v3177_v25 }
 0x57d   : > { %v3199_v28 = vmax.f32 %v3190_v26, 0.0 }
 0x57e   : > { %v3200_v29 = vmax.f32 %v3191_v27, 0.0  ;;  %v3201_v30 = vmax.f32 %v3192_v12, 0.0 }
 0x57f   : > { %3208 = vst [vmem:[%s4183_s26 + $0x30] sm:$0xff] %v3199_v28 }
 0x580   : > { %3209 = vst [vmem:[%s4183_s26 + $0x38] sm:$0xff] %v3200_v29  ;;  %3211 = vst.msk [vmem:[%s4183_s26 + $0x40] sm:$0xff] %vm3210_vm1, %v3201_v30 }
 0x581 PF: > { %s21_s17 = sadd.s32 1, %s3659_s17  }
 0x582   : > { %p18_p4 = scmp.ge.s32.totalorder %s21_s17, 4  }
 0x584   :  { %20 = sbr.rel (!%p18_p4) target bundleno = 1 (0x1), region = 94 }

</bundles_post_ra>
